<compile_context>
chip_gen: v7x
topology: tpu7x:2x2x1
jax: 0.10.0
libtpu: 0.0.40
codegen_flags: <defaults>
</compile_context>

<pallas_src>
import functools

import jax
import jax.numpy as jnp
from jax import lax
from jax.experimental import pallas as pl
from jax.experimental.pallas import tpu as pltpu

# ---------------- model config (small, synthetic) ----------------
B = 2          # batch
S = 8          # sequence length
D = 64         # hidden size
H = 4          # attention heads
HD = D // H    # head dim
F = 128        # FFN inner size
L = 2          # number of encoder layers
V = 100        # vocab size
LN_EPS = 1e-7  # DeBERTa-style layernorm eps


# ---------------- in-kernel helpers ----------------
def _layer_norm(x, g, b):
    mu = jnp.mean(x, axis=-1, keepdims=True)
    var = jnp.mean((x - mu) ** 2, axis=-1, keepdims=True)
    return (x - mu) * lax.rsqrt(var + LN_EPS) * g + b


# ------------- fused forward kernel (all layers + mean pool, whole batch) ----
def fused_forward_kernel(x_ref, mask_ref, mask_tok_ref,
                         wqkv_ref, bqkv_ref, wo_ref, bo_ref,
                         w1_ref, b1_ref, w2_ref, b2_ref, ln_ref,
                         out_ref, *, num_layers, num_heads, head_dim,
                         batch, seq):
    d_model = num_heads * head_dim
    x = x_ref[...]                       # (B*S, D) f32 residual stream
    mask = mask_ref[...]                 # (B, S)   f32; 1.0 = token, 0.0 = pad

    # Additive key-mask bias matching the sublane-stacked (B*H*S, S) score
    # tile.  Built ONCE before the layer loop (JAX does not CSE broadcasts).
    key_bias = (mask - 1.0) * 1e9        # 0 for valid keys, -1e9 for padding
    bias_full = jnp.concatenate(
        [jnp.broadcast_to(key_bias[b:b + 1, :], (num_heads * seq, seq))
         for b in range(batch)], axis=0)                       # (B*H*S, S)

    nt_dims = (((1,), (1,)), ((), ()))   # contract last dims: q @ k^T

    for l in range(num_layers):
        xb = x.astype(jnp.bfloat16)

        # ---- fused QKV projection: one (B*S, D) @ (D, 3D) matmul ----
        qkv = (jnp.dot(xb, wqkv_ref[l], preferred_element_type=jnp.float32)
               + bqkv_ref[l]).astype(jnp.bfloat16)             # (B*S, 3D) bf16
        q = qkv[:, :d_model]
        k = qkv[:, d_model:2 * d_model]
        v = qkv[:, 2 * d_model:]

        # ---- scores for every (batch, head), stacked on the sublane axis ----
        # (1/sqrt(head_dim) is already folded into Wq at build time.)
        s_blocks = []
        for b in range(batch):
            qb = q[b * seq:(b + 1) * seq]
            kb = k[b * seq:(b + 1) * seq]
            for h in range(num_heads):
                qh = qb[:, h * head_dim:(h + 1) * head_dim]
                kh = kb[:, h * head_dim:(h + 1) * head_dim]
                s_blocks.append(lax.dot_general(
                    qh, kh, nt_dims, preferred_element_type=jnp.float32))
        s = jnp.concatenate(s_blocks, axis=0) + bias_full       # (B*H*S, S) f32

        # ---- softmax batched once across all (batch, head) pairs ----
        s = s - jnp.max(s, axis=-1, keepdims=True)
        p = jnp.exp(s)
        p = p * pl.reciprocal(jnp.sum(p, axis=-1, keepdims=True), approx=True)
        p = p.astype(jnp.bfloat16)

        # ---- per-(batch, head) context, reassembled lane-dense (B*S, D) ----
        ctx_rows = []
        for b in range(batch):
            vb = v[b * seq:(b + 1) * seq]
            ctx_heads = []
            for h in range(num_heads):
                row = (b * num_heads + h) * seq
                ph = p[row:row + seq]                            # (S, S) bf16
                vh = vb[:, h * head_dim:(h + 1) * head_dim]      # (S, HD) bf16
                ctx_heads.append(jnp.dot(ph, vh,
                                         preferred_element_type=jnp.float32))
            ctx_rows.append(jnp.concatenate(ctx_heads, axis=-1))  # (S, D)
        ctx = jnp.concatenate(ctx_rows, axis=0).astype(jnp.bfloat16)  # (B*S, D)

        # ---- single fused output projection over all tokens ----
        attn = jnp.dot(ctx, wo_ref[l],
                       preferred_element_type=jnp.float32) + bo_ref[l]
        h1 = _layer_norm(x + attn, ln_ref[l, 0], ln_ref[l, 1])

        # ---- FFN ----
        ff = jnp.dot(h1.astype(jnp.bfloat16), w1_ref[l],
                     preferred_element_type=jnp.float32) + b1_ref[l]
        # TODO(synk): PyTorch nn.GELU defaults to exact erf GELU; tanh-approx
        #             GELU is used here (erf has no guaranteed Mosaic lowering).
        ff = jax.nn.gelu(ff)
        ff = jnp.dot(ff.astype(jnp.bfloat16), w2_ref[l],
                     preferred_element_type=jnp.float32) + b2_ref[l]
        x = _layer_norm(h1 + ff, ln_ref[l, 2], ln_ref[l, 3])

    # ---- masked mean pooling (MeanPooling.forward): VPU masked sum ----
    weighted = x * mask_tok_ref[...]                       # (B*S, D) * (B*S, 1)
    summed = jnp.concatenate(
        [jnp.sum(weighted[b * seq:(b + 1) * seq], axis=0, keepdims=True)
         for b in range(batch)], axis=0)                   # (B, D)
    denom = jnp.maximum(jnp.sum(mask, axis=-1, keepdims=True), 1e-9)   # (B, 1)
    out_ref[...] = summed / denom                          # exact divide


# ---------------- full forward (Transformer.forward) ----------------
def transformer_forward(input_ids, attention_mask, params):
    # embedding lookup is glue (plain JAX gather); tokens flattened to (B*S, D)
    x = (params["tok_emb"][input_ids] + params["pos_emb"][None, :, :])
    x = x.astype(jnp.float32).reshape(B * S, D)
    mask = attention_mask.astype(jnp.float32)              # (B, S) lane-dense keys
    mask_tok = mask.reshape(B * S, 1)                      # per-token row weight
    weights = params["weights"]

    kernel = functools.partial(fused_forward_kernel, num_layers=L,
                               num_heads=H, head_dim=HD, batch=B, seq=S)
    vmem = pl.BlockSpec(memory_space=pltpu.MemorySpace.VMEM)   # whole array, resident

    # Single invocation, no grid: the residual stream and the ~150 KB of
    # weights stay VMEM-resident for the entire forward.
    # (On v7x a 2-TC split would need CORE_PARALLEL / core_map; at B=2 the
    #  folded-batch single invocation is the better trade per review.)
    pooled = pl.pallas_call(
        kernel,
        out_shape=jax.ShapeDtypeStruct((B, D), jnp.float32),
        in_specs=[vmem] * (3 + len(weights)),
        out_specs=vmem,
    )(x, mask, mask_tok, *weights)
    return pooled


# ---------------- parameter init (deterministic, synthetic) ----------------
def make_params(key):
    keys = jax.random.split(key, 2 + L)
    std = 0.02
    tok_emb = jax.random.normal(keys[0], (V, D), jnp.float32) * std
    pos_emb = jax.random.normal(keys[1], (S, D), jnp.float32) * std
    scale = 1.0 / (HD ** 0.5)   # fold attention scale into Wq at build time

    wqkv, wo, w1, w2 = [], [], [], []
    for li in range(L):
        lk = jax.random.split(keys[2 + li], 6)
        wq = jax.random.normal(lk[0], (D, D), jnp.float32) * std * scale
        wk = jax.random.normal(lk[1], (D, D), jnp.float32) * std
        wv = jax.random.normal(lk[2], (D, D), jnp.float32) * std
        wqkv.append(jnp.concatenate([wq, wk, wv], axis=-1))        # (D, 3D)
        wo.append(jax.random.normal(lk[3], (D, D), jnp.float32) * std)
        w1.append(jax.random.normal(lk[4], (D, F), jnp.float32) * std)
        w2.append(jax.random.normal(lk[5], (F, D), jnp.float32) * std)

    wqkv = jnp.stack(wqkv).astype(jnp.bfloat16)     # (L, D, 3D)
    bqkv = jnp.zeros((L, 1, 3 * D), jnp.float32)
    wo = jnp.stack(wo).astype(jnp.bfloat16)         # (L, D, D)
    bo = jnp.zeros((L, 1, D), jnp.float32)
    w1 = jnp.stack(w1).astype(jnp.bfloat16)         # (L, D, F)
    b1 = jnp.zeros((L, 1, F), jnp.float32)
    w2 = jnp.stack(w2).astype(jnp.bfloat16)         # (L, F, D)
    b2 = jnp.zeros((L, 1, D), jnp.float32)
    # LayerNorm params: [l,0]=ln1_gamma [l,1]=ln1_beta [l,2]=ln2_gamma [l,3]=ln2_beta
    ln = jnp.tile(jnp.stack([jnp.ones((1, D), jnp.float32),
                             jnp.zeros((1, D), jnp.float32),
                             jnp.ones((1, D), jnp.float32),
                             jnp.zeros((1, D), jnp.float32)])[None],
                  (L, 1, 1, 1))                     # (L, 4, 1, D)
    return {"tok_emb": tok_emb, "pos_emb": pos_emb,
            "weights": (wqkv, bqkv, wo, bo, w1, b1, w2, b2, ln)}


if __name__ == "__main__":
    key = jax.random.PRNGKey(0)
    pkey, ikey = jax.random.split(key)
    params = make_params(pkey)

    input_ids = jax.random.randint(ikey, (B, S), 0, V, dtype=jnp.int32)
    attention_mask = jnp.array(
        [[1, 1, 1, 1, 1, 1, 1, 1],
         [1, 1, 1, 1, 1, 0, 0, 0]], dtype=jnp.int32)

    fwd = jax.jit(transformer_forward)
    out = jax.block_until_ready(fwd(input_ids, attention_mask, params))

    assert out.shape == (B, D)
    assert bool(jnp.all(jnp.isfinite(out)))
    print("KERNEL_OK")
</pallas_src>

<mosaic_0001>
module attributes {stable_mosaic.version = 11 : i64} {
  func.func @fused_forward_kernel(%arg0: memref<16x64xf32, #tpu.memory_space<vmem>>, %arg1: memref<2x8xf32, #tpu.memory_space<vmem>>, %arg2: memref<16x1xf32, #tpu.memory_space<vmem>>, %arg3: memref<2x64x192xbf16, #tpu.memory_space<vmem>>, %arg4: memref<2x1x192xf32, #tpu.memory_space<vmem>>, %arg5: memref<2x64x64xbf16, #tpu.memory_space<vmem>>, %arg6: memref<2x1x64xf32, #tpu.memory_space<vmem>>, %arg7: memref<2x64x128xbf16, #tpu.memory_space<vmem>>, %arg8: memref<2x1x128xf32, #tpu.memory_space<vmem>>, %arg9: memref<2x128x64xbf16, #tpu.memory_space<vmem>>, %arg10: memref<2x1x64xf32, #tpu.memory_space<vmem>>, %arg11: memref<2x4x1x64xf32, #tpu.memory_space<vmem>>, %arg12: memref<2x64xf32, #tpu.memory_space<vmem>>) attributes {dimension_semantics = [], scalar_prefetch = 0 : i64, scratch_operands = 0 : i64, tpu.core_type = #tpu.core_type<tc>} {
    %c0 = arith.constant 0 : index
    %c0_0 = arith.constant 0 : index
    %0 = vector.load %arg0[%c0, %c0_0] : memref<16x64xf32, #tpu.memory_space<vmem>>, vector<16x64xf32>
    %c0_1 = arith.constant 0 : index
    %c0_2 = arith.constant 0 : index
    %1 = vector.load %arg1[%c0_1, %c0_2] : memref<2x8xf32, #tpu.memory_space<vmem>>, vector<2x8xf32>
    %cst = arith.constant 1.000000e+00 : f32
    %2 = vector.broadcast %cst : f32 to vector<2x8xf32>
    %3 = arith.subf %1, %2 : vector<2x8xf32>
    %cst_3 = arith.constant 1.000000e+09 : f32
    %4 = vector.broadcast %cst_3 : f32 to vector<2x8xf32>
    %5 = arith.mulf %3, %4 : vector<2x8xf32>
    %6 = vector.extract_strided_slice %5 {offsets = [0, 0], sizes = [1, 8], strides = [1, 1]} : vector<2x8xf32> to vector<1x8xf32>
    %7 = vector.shape_cast %6 : vector<1x8xf32> to vector<1x8xf32>
    %8 = vector.broadcast %7 : vector<1x8xf32> to vector<32x8xf32>
    %9 = vector.extract_strided_slice %5 {offsets = [1, 0], sizes = [1, 8], strides = [1, 1]} : vector<2x8xf32> to vector<1x8xf32>
    %10 = vector.shape_cast %9 : vector<1x8xf32> to vector<1x8xf32>
    %11 = vector.broadcast %10 : vector<1x8xf32> to vector<32x8xf32>
    %12 = tpu.concatenate %8, %11 in 0 : vector<32x8xf32>, vector<32x8xf32> -> vector<64x8xf32>
    %13 = arith.truncf %0 : vector<16x64xf32> to vector<16x64xbf16>
    %c0_4 = arith.constant 0 : index
    %c0_5 = arith.constant 0 : index
    %c0_6 = arith.constant 0 : index
    %14 = vector.load %arg3[%c0_4, %c0_5, %c0_6] : memref<2x64x192xbf16, #tpu.memory_space<vmem>>, vector<1x64x192xbf16>
    %15 = vector.shape_cast %14 : vector<1x64x192xbf16> to vector<64x192xbf16>
    %cst_7 = arith.constant dense<0.000000e+00> : vector<16x192xf32>
    %16 = tpu.matmul %13, %15, %cst_7 {dimension_numbers = #tpu.dot_dimension_numbers<[1], [0], [0], [1], [0, 0, 1, 1], [], []>} : vector<16x64xbf16>, vector<64x192xbf16>, vector<16x192xf32> -> vector<16x192xf32>
    %c0_8 = arith.constant 0 : index
    %c0_9 = arith.constant 0 : index
    %c0_10 = arith.constant 0 : index
    %17 = vector.load %arg4[%c0_8, %c0_9, %c0_10] : memref<2x1x192xf32, #tpu.memory_space<vmem>>, vector<1x1x192xf32>
    %18 = vector.shape_cast %17 : vector<1x1x192xf32> to vector<1x192xf32>
    %19 = vector.broadcast %18 : vector<1x192xf32> to vector<16x192xf32>
    %20 = arith.addf %16, %19 : vector<16x192xf32>
    %21 = arith.truncf %20 : vector<16x192xf32> to vector<16x192xbf16>
    %22 = vector.extract_strided_slice %21 {offsets = [0, 0], sizes = [16, 64], strides = [1, 1]} : vector<16x192xbf16> to vector<16x64xbf16>
    %23 = vector.extract_strided_slice %21 {offsets = [0, 64], sizes = [16, 64], strides = [1, 1]} : vector<16x192xbf16> to vector<16x64xbf16>
    %24 = vector.extract_strided_slice %21 {offsets = [0, 128], sizes = [16, 64], strides = [1, 1]} : vector<16x192xbf16> to vector<16x64xbf16>
    %25 = vector.extract_strided_slice %22 {offsets = [0, 0], sizes = [8, 64], strides = [1, 1]} : vector<16x64xbf16> to vector<8x64xbf16>
    %26 = vector.extract_strided_slice %23 {offsets = [0, 0], sizes = [8, 64], strides = [1, 1]} : vector<16x64xbf16> to vector<8x64xbf16>
    %27 = vector.extract_strided_slice %25 {offsets = [0, 0], sizes = [8, 16], strides = [1, 1]} : vector<8x64xbf16> to vector<8x16xbf16>
    %28 = vector.extract_strided_slice %26 {offsets = [0, 0], sizes = [8, 16], strides = [1, 1]} : vector<8x64xbf16> to vector<8x16xbf16>
    %cst_11 = arith.constant dense<0.000000e+00> : vector<8x8xf32>
    %29 = tpu.matmul %27, %28, %cst_11 {dimension_numbers = #tpu.dot_dimension_numbers<[1], [1], [0], [0], [0, 0, 1, 0], [], []>} : vector<8x16xbf16>, vector<8x16xbf16>, vector<8x8xf32> -> vector<8x8xf32>
    %30 = vector.extract_strided_slice %25 {offsets = [0, 16], sizes = [8, 16], strides = [1, 1]} : vector<8x64xbf16> to vector<8x16xbf16>
    %31 = vector.extract_strided_slice %26 {offsets = [0, 16], sizes = [8, 16], strides = [1, 1]} : vector<8x64xbf16> to vector<8x16xbf16>
    %cst_12 = arith.constant dense<0.000000e+00> : vector<8x8xf32>
    %32 = tpu.matmul %30, %31, %cst_12 {dimension_numbers = #tpu.dot_dimension_numbers<[1], [1], [0], [0], [0, 0, 1, 0], [], []>} : vector<8x16xbf16>, vector<8x16xbf16>, vector<8x8xf32> -> vector<8x8xf32>
    %33 = vector.extract_strided_slice %25 {offsets = [0, 32], sizes = [8, 16], strides = [1, 1]} : vector<8x64xbf16> to vector<8x16xbf16>
    %34 = vector.extract_strided_slice %26 {offsets = [0, 32], sizes = [8, 16], strides = [1, 1]} : vector<8x64xbf16> to vector<8x16xbf16>
    %cst_13 = arith.constant dense<0.000000e+00> : vector<8x8xf32>
    %35 = tpu.matmul %33, %34, %cst_13 {dimension_numbers = #tpu.dot_dimension_numbers<[1], [1], [0], [0], [0, 0, 1, 0], [], []>} : vector<8x16xbf16>, vector<8x16xbf16>, vector<8x8xf32> -> vector<8x8xf32>
    %36 = vector.extract_strided_slice %25 {offsets = [0, 48], sizes = [8, 16], strides = [1, 1]} : vector<8x64xbf16> to vector<8x16xbf16>
    %37 = vector.extract_strided_slice %26 {offsets = [0, 48], sizes = [8, 16], strides = [1, 1]} : vector<8x64xbf16> to vector<8x16xbf16>
    %cst_14 = arith.constant dense<0.000000e+00> : vector<8x8xf32>
    %38 = tpu.matmul %36, %37, %cst_14 {dimension_numbers = #tpu.dot_dimension_numbers<[1], [1], [0], [0], [0, 0, 1, 0], [], []>} : vector<8x16xbf16>, vector<8x16xbf16>, vector<8x8xf32> -> vector<8x8xf32>
    %39 = vector.extract_strided_slice %22 {offsets = [8, 0], sizes = [8, 64], strides = [1, 1]} : vector<16x64xbf16> to vector<8x64xbf16>
    %40 = vector.extract_strided_slice %23 {offsets = [8, 0], sizes = [8, 64], strides = [1, 1]} : vector<16x64xbf16> to vector<8x64xbf16>
    %41 = vector.extract_strided_slice %39 {offsets = [0, 0], sizes = [8, 16], strides = [1, 1]} : vector<8x64xbf16> to vector<8x16xbf16>
    %42 = vector.extract_strided_slice %40 {offsets = [0, 0], sizes = [8, 16], strides = [1, 1]} : vector<8x64xbf16> to vector<8x16xbf16>
    %cst_15 = arith.constant dense<0.000000e+00> : vector<8x8xf32>
    %43 = tpu.matmul %41, %42, %cst_15 {dimension_numbers = #tpu.dot_dimension_numbers<[1], [1], [0], [0], [0, 0, 1, 0], [], []>} : vector<8x16xbf16>, vector<8x16xbf16>, vector<8x8xf32> -> vector<8x8xf32>
    %44 = vector.extract_strided_slice %39 {offsets = [0, 16], sizes = [8, 16], strides = [1, 1]} : vector<8x64xbf16> to vector<8x16xbf16>
    %45 = vector.extract_strided_slice %40 {offsets = [0, 16], sizes = [8, 16], strides = [1, 1]} : vector<8x64xbf16> to vector<8x16xbf16>
    %cst_16 = arith.constant dense<0.000000e+00> : vector<8x8xf32>
    %46 = tpu.matmul %44, %45, %cst_16 {dimension_numbers = #tpu.dot_dimension_numbers<[1], [1], [0], [0], [0, 0, 1, 0], [], []>} : vector<8x16xbf16>, vector<8x16xbf16>, vector<8x8xf32> -> vector<8x8xf32>
    %47 = vector.extract_strided_slice %39 {offsets = [0, 32], sizes = [8, 16], strides = [1, 1]} : vector<8x64xbf16> to vector<8x16xbf16>
    %48 = vector.extract_strided_slice %40 {offsets = [0, 32], sizes = [8, 16], strides = [1, 1]} : vector<8x64xbf16> to vector<8x16xbf16>
    %cst_17 = arith.constant dense<0.000000e+00> : vector<8x8xf32>
    %49 = tpu.matmul %47, %48, %cst_17 {dimension_numbers = #tpu.dot_dimension_numbers<[1], [1], [0], [0], [0, 0, 1, 0], [], []>} : vector<8x16xbf16>, vector<8x16xbf16>, vector<8x8xf32> -> vector<8x8xf32>
    %50 = vector.extract_strided_slice %39 {offsets = [0, 48], sizes = [8, 16], strides = [1, 1]} : vector<8x64xbf16> to vector<8x16xbf16>
    %51 = vector.extract_strided_slice %40 {offsets = [0, 48], sizes = [8, 16], strides = [1, 1]} : vector<8x64xbf16> to vector<8x16xbf16>
    %cst_18 = arith.constant dense<0.000000e+00> : vector<8x8xf32>
    %52 = tpu.matmul %50, %51, %cst_18 {dimension_numbers = #tpu.dot_dimension_numbers<[1], [1], [0], [0], [0, 0, 1, 0], [], []>} : vector<8x16xbf16>, vector<8x16xbf16>, vector<8x8xf32> -> vector<8x8xf32>
    %53 = tpu.concatenate %29, %32, %35, %38, %43, %46, %49, %52 in 0 : vector<8x8xf32>, vector<8x8xf32>, vector<8x8xf32>, vector<8x8xf32>, vector<8x8xf32>, vector<8x8xf32>, vector<8x8xf32>, vector<8x8xf32> -> vector<64x8xf32>
    %54 = arith.addf %53, %12 : vector<64x8xf32>
    %cst_19 = arith.constant dense<0xFF800000> : vector<64xf32>
    %55 = vector.multi_reduction <maximumf>, %54, %cst_19 [1] : vector<64x8xf32> to vector<64xf32>
    %56 = vector.shape_cast %55 : vector<64xf32> to vector<64x1xf32>
    %57 = vector.broadcast %56 : vector<64x1xf32> to vector<64x8xf32>
    %58 = arith.subf %54, %57 : vector<64x8xf32>
    %59 = math.exp %58 : vector<64x8xf32>
    %cst_20 = arith.constant dense<0.000000e+00> : vector<64xf32>
    %60 = vector.multi_reduction <add>, %59, %cst_20 [1] : vector<64x8xf32> to vector<64xf32>
    %61 = vector.shape_cast %60 : vector<64xf32> to vector<64x1xf32>
    %62 = tpu.reciprocal %61 {approx = true} : vector<64x1xf32> -> vector<64x1xf32>
    %63 = vector.broadcast %62 : vector<64x1xf32> to vector<64x8xf32>
    %64 = arith.mulf %59, %63 : vector<64x8xf32>
    %65 = arith.truncf %64 : vector<64x8xf32> to vector<64x8xbf16>
    %66 = vector.extract_strided_slice %24 {offsets = [0, 0], sizes = [8, 64], strides = [1, 1]} : vector<16x64xbf16> to vector<8x64xbf16>
    %67 = vector.extract_strided_slice %65 {offsets = [0, 0], sizes = [8, 8], strides = [1, 1]} : vector<64x8xbf16> to vector<8x8xbf16>
    %68 = vector.extract_strided_slice %66 {offsets = [0, 0], sizes = [8, 16], strides = [1, 1]} : vector<8x64xbf16> to vector<8x16xbf16>
    %cst_21 = arith.constant dense<0.000000e+00> : vector<8x16xf32>
    %69 = tpu.matmul %67, %68, %cst_21 {dimension_numbers = #tpu.dot_dimension_numbers<[1], [0], [0], [1], [0, 0, 1, 1], [], []>} : vector<8x8xbf16>, vector<8x16xbf16>, vector<8x16xf32> -> vector<8x16xf32>
    %70 = vector.extract_strided_slice %65 {offsets = [8, 0], sizes = [8, 8], strides = [1, 1]} : vector<64x8xbf16> to vector<8x8xbf16>
    %71 = vector.extract_strided_slice %66 {offsets = [0, 16], sizes = [8, 16], strides = [1, 1]} : vector<8x64xbf16> to vector<8x16xbf16>
    %cst_22 = arith.constant dense<0.000000e+00> : vector<8x16xf32>
    %72 = tpu.matmul %70, %71, %cst_22 {dimension_numbers = #tpu.dot_dimension_numbers<[1], [0], [0], [1], [0, 0, 1, 1], [], []>} : vector<8x8xbf16>, vector<8x16xbf16>, vector<8x16xf32> -> vector<8x16xf32>
    %73 = vector.extract_strided_slice %65 {offsets = [16, 0], sizes = [8, 8], strides = [1, 1]} : vector<64x8xbf16> to vector<8x8xbf16>
    %74 = vector.extract_strided_slice %66 {offsets = [0, 32], sizes = [8, 16], strides = [1, 1]} : vector<8x64xbf16> to vector<8x16xbf16>
    %cst_23 = arith.constant dense<0.000000e+00> : vector<8x16xf32>
    %75 = tpu.matmul %73, %74, %cst_23 {dimension_numbers = #tpu.dot_dimension_numbers<[1], [0], [0], [1], [0, 0, 1, 1], [], []>} : vector<8x8xbf16>, vector<8x16xbf16>, vector<8x16xf32> -> vector<8x16xf32>
    %76 = vector.extract_strided_slice %65 {offsets = [24, 0], sizes = [8, 8], strides = [1, 1]} : vector<64x8xbf16> to vector<8x8xbf16>
    %77 = vector.extract_strided_slice %66 {offsets = [0, 48], sizes = [8, 16], strides = [1, 1]} : vector<8x64xbf16> to vector<8x16xbf16>
    %cst_24 = arith.constant dense<0.000000e+00> : vector<8x16xf32>
    %78 = tpu.matmul %76, %77, %cst_24 {dimension_numbers = #tpu.dot_dimension_numbers<[1], [0], [0], [1], [0, 0, 1, 1], [], []>} : vector<8x8xbf16>, vector<8x16xbf16>, vector<8x16xf32> -> vector<8x16xf32>
    %79 = tpu.concatenate %69, %72, %75, %78 in 1 : vector<8x16xf32>, vector<8x16xf32>, vector<8x16xf32>, vector<8x16xf32> -> vector<8x64xf32>
    %80 = vector.extract_strided_slice %24 {offsets = [8, 0], sizes = [8, 64], strides = [1, 1]} : vector<16x64xbf16> to vector<8x64xbf16>
    %81 = vector.extract_strided_slice %65 {offsets = [32, 0], sizes = [8, 8], strides = [1, 1]} : vector<64x8xbf16> to vector<8x8xbf16>
    %82 = vector.extract_strided_slice %80 {offsets = [0, 0], sizes = [8, 16], strides = [1, 1]} : vector<8x64xbf16> to vector<8x16xbf16>
    %cst_25 = arith.constant dense<0.000000e+00> : vector<8x16xf32>
    %83 = tpu.matmul %81, %82, %cst_25 {dimension_numbers = #tpu.dot_dimension_numbers<[1], [0], [0], [1], [0, 0, 1, 1], [], []>} : vector<8x8xbf16>, vector<8x16xbf16>, vector<8x16xf32> -> vector<8x16xf32>
    %84 = vector.extract_strided_slice %65 {offsets = [40, 0], sizes = [8, 8], strides = [1, 1]} : vector<64x8xbf16> to vector<8x8xbf16>
    %85 = vector.extract_strided_slice %80 {offsets = [0, 16], sizes = [8, 16], strides = [1, 1]} : vector<8x64xbf16> to vector<8x16xbf16>
    %cst_26 = arith.constant dense<0.000000e+00> : vector<8x16xf32>
    %86 = tpu.matmul %84, %85, %cst_26 {dimension_numbers = #tpu.dot_dimension_numbers<[1], [0], [0], [1], [0, 0, 1, 1], [], []>} : vector<8x8xbf16>, vector<8x16xbf16>, vector<8x16xf32> -> vector<8x16xf32>
    %87 = vector.extract_strided_slice %65 {offsets = [48, 0], sizes = [8, 8], strides = [1, 1]} : vector<64x8xbf16> to vector<8x8xbf16>
    %88 = vector.extract_strided_slice %80 {offsets = [0, 32], sizes = [8, 16], strides = [1, 1]} : vector<8x64xbf16> to vector<8x16xbf16>
    %cst_27 = arith.constant dense<0.000000e+00> : vector<8x16xf32>
    %89 = tpu.matmul %87, %88, %cst_27 {dimension_numbers = #tpu.dot_dimension_numbers<[1], [0], [0], [1], [0, 0, 1, 1], [], []>} : vector<8x8xbf16>, vector<8x16xbf16>, vector<8x16xf32> -> vector<8x16xf32>
    %90 = vector.extract_strided_slice %65 {offsets = [56, 0], sizes = [8, 8], strides = [1, 1]} : vector<64x8xbf16> to vector<8x8xbf16>
    %91 = vector.extract_strided_slice %80 {offsets = [0, 48], sizes = [8, 16], strides = [1, 1]} : vector<8x64xbf16> to vector<8x16xbf16>
    %cst_28 = arith.constant dense<0.000000e+00> : vector<8x16xf32>
    %92 = tpu.matmul %90, %91, %cst_28 {dimension_numbers = #tpu.dot_dimension_numbers<[1], [0], [0], [1], [0, 0, 1, 1], [], []>} : vector<8x8xbf16>, vector<8x16xbf16>, vector<8x16xf32> -> vector<8x16xf32>
    %93 = tpu.concatenate %83, %86, %89, %92 in 1 : vector<8x16xf32>, vector<8x16xf32>, vector<8x16xf32>, vector<8x16xf32> -> vector<8x64xf32>
    %94 = tpu.concatenate %79, %93 in 0 : vector<8x64xf32>, vector<8x64xf32> -> vector<16x64xf32>
    %95 = arith.truncf %94 : vector<16x64xf32> to vector<16x64xbf16>
    %c0_29 = arith.constant 0 : index
    %c0_30 = arith.constant 0 : index
    %c0_31 = arith.constant 0 : index
    %96 = vector.load %arg5[%c0_29, %c0_30, %c0_31] : memref<2x64x64xbf16, #tpu.memory_space<vmem>>, vector<1x64x64xbf16>
    %97 = vector.shape_cast %96 : vector<1x64x64xbf16> to vector<64x64xbf16>
    %cst_32 = arith.constant dense<0.000000e+00> : vector<16x64xf32>
    %98 = tpu.matmul %95, %97, %cst_32 {dimension_numbers = #tpu.dot_dimension_numbers<[1], [0], [0], [1], [0, 0, 1, 1], [], []>} : vector<16x64xbf16>, vector<64x64xbf16>, vector<16x64xf32> -> vector<16x64xf32>
    %c0_33 = arith.constant 0 : index
    %c0_34 = arith.constant 0 : index
    %c0_35 = arith.constant 0 : index
    %99 = vector.load %arg6[%c0_33, %c0_34, %c0_35] : memref<2x1x64xf32, #tpu.memory_space<vmem>>, vector<1x1x64xf32>
    %100 = vector.shape_cast %99 : vector<1x1x64xf32> to vector<1x64xf32>
    %101 = vector.broadcast %100 : vector<1x64xf32> to vector<16x64xf32>
    %102 = arith.addf %98, %101 : vector<16x64xf32>
    %103 = arith.addf %0, %102 : vector<16x64xf32>
    %c0_36 = arith.constant 0 : index
    %c0_37 = arith.constant 0 : index
    %c0_38 = arith.constant 0 : index
    %c0_39 = arith.constant 0 : index
    %104 = vector.load %arg11[%c0_36, %c0_37, %c0_38, %c0_39] : memref<2x4x1x64xf32, #tpu.memory_space<vmem>>, vector<1x1x1x64xf32>
    %105 = vector.shape_cast %104 : vector<1x1x1x64xf32> to vector<1x64xf32>
    %c0_40 = arith.constant 0 : index
    %c1 = arith.constant 1 : index
    %c0_41 = arith.constant 0 : index
    %c0_42 = arith.constant 0 : index
    %106 = vector.load %arg11[%c0_40, %c1, %c0_41, %c0_42] : memref<2x4x1x64xf32, #tpu.memory_space<vmem>>, vector<1x1x1x64xf32>
    %107 = vector.shape_cast %106 : vector<1x1x1x64xf32> to vector<1x64xf32>
    %cst_43 = arith.constant dense<0.000000e+00> : vector<16xf32>
    %108 = vector.multi_reduction <add>, %103, %cst_43 [1] : vector<16x64xf32> to vector<16xf32>
    %109 = vector.shape_cast %108 : vector<16xf32> to vector<16x1xf32>
    %cst_44 = arith.constant 6.400000e+01 : f32
    %110 = vector.broadcast %cst_44 : f32 to vector<16x1xf32>
    %111 = arith.divf %109, %110 : vector<16x1xf32>
    %112 = vector.broadcast %111 : vector<16x1xf32> to vector<16x64xf32>
    %113 = arith.subf %103, %112 : vector<16x64xf32>
    %114 = arith.mulf %113, %113 : vector<16x64xf32>
    %cst_45 = arith.constant dense<0.000000e+00> : vector<16xf32>
    %115 = vector.multi_reduction <add>, %114, %cst_45 [1] : vector<16x64xf32> to vector<16xf32>
    %116 = vector.shape_cast %115 : vector<16xf32> to vector<16x1xf32>
    %cst_46 = arith.constant 6.400000e+01 : f32
    %117 = vector.broadcast %cst_46 : f32 to vector<16x1xf32>
    %118 = arith.divf %116, %117 : vector<16x1xf32>
    %119 = vector.broadcast %111 : vector<16x1xf32> to vector<16x64xf32>
    %120 = arith.subf %103, %119 : vector<16x64xf32>
    %cst_47 = arith.constant 1.000000e-07 : f32
    %121 = vector.broadcast %cst_47 : f32 to vector<16x1xf32>
    %122 = arith.addf %118, %121 : vector<16x1xf32>
    %123 = math.rsqrt %122 : vector<16x1xf32>
    %124 = vector.broadcast %123 : vector<16x1xf32> to vector<16x64xf32>
    %125 = arith.mulf %120, %124 : vector<16x64xf32>
    %126 = vector.broadcast %105 : vector<1x64xf32> to vector<16x64xf32>
    %127 = arith.mulf %125, %126 : vector<16x64xf32>
    %128 = vector.broadcast %107 : vector<1x64xf32> to vector<16x64xf32>
    %129 = arith.addf %127, %128 : vector<16x64xf32>
    %130 = arith.truncf %129 : vector<16x64xf32> to vector<16x64xbf16>
    %c0_48 = arith.constant 0 : index
    %c0_49 = arith.constant 0 : index
    %c0_50 = arith.constant 0 : index
    %131 = vector.load %arg7[%c0_48, %c0_49, %c0_50] : memref<2x64x128xbf16, #tpu.memory_space<vmem>>, vector<1x64x128xbf16>
    %132 = vector.shape_cast %131 : vector<1x64x128xbf16> to vector<64x128xbf16>
    %cst_51 = arith.constant dense<0.000000e+00> : vector<16x128xf32>
    %133 = tpu.matmul %130, %132, %cst_51 {dimension_numbers = #tpu.dot_dimension_numbers<[1], [0], [0], [1], [0, 0, 1, 1], [], []>} : vector<16x64xbf16>, vector<64x128xbf16>, vector<16x128xf32> -> vector<16x128xf32>
    %c0_52 = arith.constant 0 : index
    %c0_53 = arith.constant 0 : index
    %c0_54 = arith.constant 0 : index
    %134 = vector.load %arg8[%c0_52, %c0_53, %c0_54] : memref<2x1x128xf32, #tpu.memory_space<vmem>>, vector<1x1x128xf32>
    %135 = vector.shape_cast %134 : vector<1x1x128xf32> to vector<1x128xf32>
    %136 = vector.broadcast %135 : vector<1x128xf32> to vector<16x128xf32>
    %137 = arith.addf %133, %136 : vector<16x128xf32>
    %138 = arith.mulf %137, %137 : vector<16x128xf32>
    %139 = arith.mulf %137, %138 : vector<16x128xf32>
    %cst_55 = arith.constant 4.471500e-02 : f32
    %140 = vector.broadcast %cst_55 : f32 to vector<16x128xf32>
    %141 = arith.mulf %140, %139 : vector<16x128xf32>
    %142 = arith.addf %137, %141 : vector<16x128xf32>
    %cst_56 = arith.constant 0.797884583 : f32
    %143 = vector.broadcast %cst_56 : f32 to vector<16x128xf32>
    %144 = arith.mulf %143, %142 : vector<16x128xf32>
    %145 = math.tanh %144 : vector<16x128xf32>
    %cst_57 = arith.constant 1.000000e+00 : f32
    %146 = vector.broadcast %cst_57 : f32 to vector<16x128xf32>
    %147 = arith.addf %146, %145 : vector<16x128xf32>
    %cst_58 = arith.constant 5.000000e-01 : f32
    %148 = vector.broadcast %cst_58 : f32 to vector<16x128xf32>
    %149 = arith.mulf %148, %147 : vector<16x128xf32>
    %150 = arith.mulf %137, %149 : vector<16x128xf32>
    %151 = arith.truncf %150 : vector<16x128xf32> to vector<16x128xbf16>
    %c0_59 = arith.constant 0 : index
    %c0_60 = arith.constant 0 : index
    %c0_61 = arith.constant 0 : index
    %152 = vector.load %arg9[%c0_59, %c0_60, %c0_61] : memref<2x128x64xbf16, #tpu.memory_space<vmem>>, vector<1x128x64xbf16>
    %153 = vector.shape_cast %152 : vector<1x128x64xbf16> to vector<128x64xbf16>
    %cst_62 = arith.constant dense<0.000000e+00> : vector<16x64xf32>
    %154 = tpu.matmul %151, %153, %cst_62 {dimension_numbers = #tpu.dot_dimension_numbers<[1], [0], [0], [1], [0, 0, 1, 1], [], []>} : vector<16x128xbf16>, vector<128x64xbf16>, vector<16x64xf32> -> vector<16x64xf32>
    %c0_63 = arith.constant 0 : index
    %c0_64 = arith.constant 0 : index
    %c0_65 = arith.constant 0 : index
    %155 = vector.load %arg10[%c0_63, %c0_64, %c0_65] : memref<2x1x64xf32, #tpu.memory_space<vmem>>, vector<1x1x64xf32>
    %156 = vector.shape_cast %155 : vector<1x1x64xf32> to vector<1x64xf32>
    %157 = vector.broadcast %156 : vector<1x64xf32> to vector<16x64xf32>
    %158 = arith.addf %154, %157 : vector<16x64xf32>
    %159 = arith.addf %129, %158 : vector<16x64xf32>
    %c0_66 = arith.constant 0 : index
    %c2 = arith.constant 2 : index
    %c0_67 = arith.constant 0 : index
    %c0_68 = arith.constant 0 : index
    %160 = vector.load %arg11[%c0_66, %c2, %c0_67, %c0_68] : memref<2x4x1x64xf32, #tpu.memory_space<vmem>>, vector<1x1x1x64xf32>
    %161 = vector.shape_cast %160 : vector<1x1x1x64xf32> to vector<1x64xf32>
    %c0_69 = arith.constant 0 : index
    %c3 = arith.constant 3 : index
    %c0_70 = arith.constant 0 : index
    %c0_71 = arith.constant 0 : index
    %162 = vector.load %arg11[%c0_69, %c3, %c0_70, %c0_71] : memref<2x4x1x64xf32, #tpu.memory_space<vmem>>, vector<1x1x1x64xf32>
    %163 = vector.shape_cast %162 : vector<1x1x1x64xf32> to vector<1x64xf32>
    %cst_72 = arith.constant dense<0.000000e+00> : vector<16xf32>
    %164 = vector.multi_reduction <add>, %159, %cst_72 [1] : vector<16x64xf32> to vector<16xf32>
    %165 = vector.shape_cast %164 : vector<16xf32> to vector<16x1xf32>
    %cst_73 = arith.constant 6.400000e+01 : f32
    %166 = vector.broadcast %cst_73 : f32 to vector<16x1xf32>
    %167 = arith.divf %165, %166 : vector<16x1xf32>
    %168 = vector.broadcast %167 : vector<16x1xf32> to vector<16x64xf32>
    %169 = arith.subf %159, %168 : vector<16x64xf32>
    %170 = arith.mulf %169, %169 : vector<16x64xf32>
    %cst_74 = arith.constant dense<0.000000e+00> : vector<16xf32>
    %171 = vector.multi_reduction <add>, %170, %cst_74 [1] : vector<16x64xf32> to vector<16xf32>
    %172 = vector.shape_cast %171 : vector<16xf32> to vector<16x1xf32>
    %cst_75 = arith.constant 6.400000e+01 : f32
    %173 = vector.broadcast %cst_75 : f32 to vector<16x1xf32>
    %174 = arith.divf %172, %173 : vector<16x1xf32>
    %175 = vector.broadcast %167 : vector<16x1xf32> to vector<16x64xf32>
    %176 = arith.subf %159, %175 : vector<16x64xf32>
    %cst_76 = arith.constant 1.000000e-07 : f32
    %177 = vector.broadcast %cst_76 : f32 to vector<16x1xf32>
    %178 = arith.addf %174, %177 : vector<16x1xf32>
    %179 = math.rsqrt %178 : vector<16x1xf32>
    %180 = vector.broadcast %179 : vector<16x1xf32> to vector<16x64xf32>
    %181 = arith.mulf %176, %180 : vector<16x64xf32>
    %182 = vector.broadcast %161 : vector<1x64xf32> to vector<16x64xf32>
    %183 = arith.mulf %181, %182 : vector<16x64xf32>
    %184 = vector.broadcast %163 : vector<1x64xf32> to vector<16x64xf32>
    %185 = arith.addf %183, %184 : vector<16x64xf32>
    %186 = arith.truncf %185 : vector<16x64xf32> to vector<16x64xbf16>
    %c1_77 = arith.constant 1 : index
    %c0_78 = arith.constant 0 : index
    %c0_79 = arith.constant 0 : index
    %187 = vector.load %arg3[%c1_77, %c0_78, %c0_79] : memref<2x64x192xbf16, #tpu.memory_space<vmem>>, vector<1x64x192xbf16>
    %188 = vector.shape_cast %187 : vector<1x64x192xbf16> to vector<64x192xbf16>
    %cst_80 = arith.constant dense<0.000000e+00> : vector<16x192xf32>
    %189 = tpu.matmul %186, %188, %cst_80 {dimension_numbers = #tpu.dot_dimension_numbers<[1], [0], [0], [1], [0, 0, 1, 1], [], []>} : vector<16x64xbf16>, vector<64x192xbf16>, vector<16x192xf32> -> vector<16x192xf32>
    %c1_81 = arith.constant 1 : index
    %c0_82 = arith.constant 0 : index
    %c0_83 = arith.constant 0 : index
    %190 = vector.load %arg4[%c1_81, %c0_82, %c0_83] : memref<2x1x192xf32, #tpu.memory_space<vmem>>, vector<1x1x192xf32>
    %191 = vector.shape_cast %190 : vector<1x1x192xf32> to vector<1x192xf32>
    %192 = vector.broadcast %191 : vector<1x192xf32> to vector<16x192xf32>
    %193 = arith.addf %189, %192 : vector<16x192xf32>
    %194 = arith.truncf %193 : vector<16x192xf32> to vector<16x192xbf16>
    %195 = vector.extract_strided_slice %194 {offsets = [0, 0], sizes = [16, 64], strides = [1, 1]} : vector<16x192xbf16> to vector<16x64xbf16>
    %196 = vector.extract_strided_slice %194 {offsets = [0, 64], sizes = [16, 64], strides = [1, 1]} : vector<16x192xbf16> to vector<16x64xbf16>
    %197 = vector.extract_strided_slice %194 {offsets = [0, 128], sizes = [16, 64], strides = [1, 1]} : vector<16x192xbf16> to vector<16x64xbf16>
    %198 = vector.extract_strided_slice %195 {offsets = [0, 0], sizes = [8, 64], strides = [1, 1]} : vector<16x64xbf16> to vector<8x64xbf16>
    %199 = vector.extract_strided_slice %196 {offsets = [0, 0], sizes = [8, 64], strides = [1, 1]} : vector<16x64xbf16> to vector<8x64xbf16>
    %200 = vector.extract_strided_slice %198 {offsets = [0, 0], sizes = [8, 16], strides = [1, 1]} : vector<8x64xbf16> to vector<8x16xbf16>
    %201 = vector.extract_strided_slice %199 {offsets = [0, 0], sizes = [8, 16], strides = [1, 1]} : vector<8x64xbf16> to vector<8x16xbf16>
    %cst_84 = arith.constant dense<0.000000e+00> : vector<8x8xf32>
    %202 = tpu.matmul %200, %201, %cst_84 {dimension_numbers = #tpu.dot_dimension_numbers<[1], [1], [0], [0], [0, 0, 1, 0], [], []>} : vector<8x16xbf16>, vector<8x16xbf16>, vector<8x8xf32> -> vector<8x8xf32>
    %203 = vector.extract_strided_slice %198 {offsets = [0, 16], sizes = [8, 16], strides = [1, 1]} : vector<8x64xbf16> to vector<8x16xbf16>
    %204 = vector.extract_strided_slice %199 {offsets = [0, 16], sizes = [8, 16], strides = [1, 1]} : vector<8x64xbf16> to vector<8x16xbf16>
    %cst_85 = arith.constant dense<0.000000e+00> : vector<8x8xf32>
    %205 = tpu.matmul %203, %204, %cst_85 {dimension_numbers = #tpu.dot_dimension_numbers<[1], [1], [0], [0], [0, 0, 1, 0], [], []>} : vector<8x16xbf16>, vector<8x16xbf16>, vector<8x8xf32> -> vector<8x8xf32>
    %206 = vector.extract_strided_slice %198 {offsets = [0, 32], sizes = [8, 16], strides = [1, 1]} : vector<8x64xbf16> to vector<8x16xbf16>
    %207 = vector.extract_strided_slice %199 {offsets = [0, 32], sizes = [8, 16], strides = [1, 1]} : vector<8x64xbf16> to vector<8x16xbf16>
    %cst_86 = arith.constant dense<0.000000e+00> : vector<8x8xf32>
    %208 = tpu.matmul %206, %207, %cst_86 {dimension_numbers = #tpu.dot_dimension_numbers<[1], [1], [0], [0], [0, 0, 1, 0], [], []>} : vector<8x16xbf16>, vector<8x16xbf16>, vector<8x8xf32> -> vector<8x8xf32>
    %209 = vector.extract_strided_slice %198 {offsets = [0, 48], sizes = [8, 16], strides = [1, 1]} : vector<8x64xbf16> to vector<8x16xbf16>
    %210 = vector.extract_strided_slice %199 {offsets = [0, 48], sizes = [8, 16], strides = [1, 1]} : vector<8x64xbf16> to vector<8x16xbf16>
    %cst_87 = arith.constant dense<0.000000e+00> : vector<8x8xf32>
    %211 = tpu.matmul %209, %210, %cst_87 {dimension_numbers = #tpu.dot_dimension_numbers<[1], [1], [0], [0], [0, 0, 1, 0], [], []>} : vector<8x16xbf16>, vector<8x16xbf16>, vector<8x8xf32> -> vector<8x8xf32>
    %212 = vector.extract_strided_slice %195 {offsets = [8, 0], sizes = [8, 64], strides = [1, 1]} : vector<16x64xbf16> to vector<8x64xbf16>
    %213 = vector.extract_strided_slice %196 {offsets = [8, 0], sizes = [8, 64], strides = [1, 1]} : vector<16x64xbf16> to vector<8x64xbf16>
    %214 = vector.extract_strided_slice %212 {offsets = [0, 0], sizes = [8, 16], strides = [1, 1]} : vector<8x64xbf16> to vector<8x16xbf16>
    %215 = vector.extract_strided_slice %213 {offsets = [0, 0], sizes = [8, 16], strides = [1, 1]} : vector<8x64xbf16> to vector<8x16xbf16>
    %cst_88 = arith.constant dense<0.000000e+00> : vector<8x8xf32>
    %216 = tpu.matmul %214, %215, %cst_88 {dimension_numbers = #tpu.dot_dimension_numbers<[1], [1], [0], [0], [0, 0, 1, 0], [], []>} : vector<8x16xbf16>, vector<8x16xbf16>, vector<8x8xf32> -> vector<8x8xf32>
    %217 = vector.extract_strided_slice %212 {offsets = [0, 16], sizes = [8, 16], strides = [1, 1]} : vector<8x64xbf16> to vector<8x16xbf16>
    %218 = vector.extract_strided_slice %213 {offsets = [0, 16], sizes = [8, 16], strides = [1, 1]} : vector<8x64xbf16> to vector<8x16xbf16>
    %cst_89 = arith.constant dense<0.000000e+00> : vector<8x8xf32>
    %219 = tpu.matmul %217, %218, %cst_89 {dimension_numbers = #tpu.dot_dimension_numbers<[1], [1], [0], [0], [0, 0, 1, 0], [], []>} : vector<8x16xbf16>, vector<8x16xbf16>, vector<8x8xf32> -> vector<8x8xf32>
    %220 = vector.extract_strided_slice %212 {offsets = [0, 32], sizes = [8, 16], strides = [1, 1]} : vector<8x64xbf16> to vector<8x16xbf16>
    %221 = vector.extract_strided_slice %213 {offsets = [0, 32], sizes = [8, 16], strides = [1, 1]} : vector<8x64xbf16> to vector<8x16xbf16>
    %cst_90 = arith.constant dense<0.000000e+00> : vector<8x8xf32>
    %222 = tpu.matmul %220, %221, %cst_90 {dimension_numbers = #tpu.dot_dimension_numbers<[1], [1], [0], [0], [0, 0, 1, 0], [], []>} : vector<8x16xbf16>, vector<8x16xbf16>, vector<8x8xf32> -> vector<8x8xf32>
    %223 = vector.extract_strided_slice %212 {offsets = [0, 48], sizes = [8, 16], strides = [1, 1]} : vector<8x64xbf16> to vector<8x16xbf16>
    %224 = vector.extract_strided_slice %213 {offsets = [0, 48], sizes = [8, 16], strides = [1, 1]} : vector<8x64xbf16> to vector<8x16xbf16>
    %cst_91 = arith.constant dense<0.000000e+00> : vector<8x8xf32>
    %225 = tpu.matmul %223, %224, %cst_91 {dimension_numbers = #tpu.dot_dimension_numbers<[1], [1], [0], [0], [0, 0, 1, 0], [], []>} : vector<8x16xbf16>, vector<8x16xbf16>, vector<8x8xf32> -> vector<8x8xf32>
    %226 = tpu.concatenate %202, %205, %208, %211, %216, %219, %222, %225 in 0 : vector<8x8xf32>, vector<8x8xf32>, vector<8x8xf32>, vector<8x8xf32>, vector<8x8xf32>, vector<8x8xf32>, vector<8x8xf32>, vector<8x8xf32> -> vector<64x8xf32>
    %227 = arith.addf %226, %12 : vector<64x8xf32>
    %cst_92 = arith.constant dense<0xFF800000> : vector<64xf32>
    %228 = vector.multi_reduction <maximumf>, %227, %cst_92 [1] : vector<64x8xf32> to vector<64xf32>
    %229 = vector.shape_cast %228 : vector<64xf32> to vector<64x1xf32>
    %230 = vector.broadcast %229 : vector<64x1xf32> to vector<64x8xf32>
    %231 = arith.subf %227, %230 : vector<64x8xf32>
    %232 = math.exp %231 : vector<64x8xf32>
    %cst_93 = arith.constant dense<0.000000e+00> : vector<64xf32>
    %233 = vector.multi_reduction <add>, %232, %cst_93 [1] : vector<64x8xf32> to vector<64xf32>
    %234 = vector.shape_cast %233 : vector<64xf32> to vector<64x1xf32>
    %235 = tpu.reciprocal %234 {approx = true} : vector<64x1xf32> -> vector<64x1xf32>
    %236 = vector.broadcast %235 : vector<64x1xf32> to vector<64x8xf32>
    %237 = arith.mulf %232, %236 : vector<64x8xf32>
    %238 = arith.truncf %237 : vector<64x8xf32> to vector<64x8xbf16>
    %239 = vector.extract_strided_slice %197 {offsets = [0, 0], sizes = [8, 64], strides = [1, 1]} : vector<16x64xbf16> to vector<8x64xbf16>
    %240 = vector.extract_strided_slice %238 {offsets = [0, 0], sizes = [8, 8], strides = [1, 1]} : vector<64x8xbf16> to vector<8x8xbf16>
    %241 = vector.extract_strided_slice %239 {offsets = [0, 0], sizes = [8, 16], strides = [1, 1]} : vector<8x64xbf16> to vector<8x16xbf16>
    %cst_94 = arith.constant dense<0.000000e+00> : vector<8x16xf32>
    %242 = tpu.matmul %240, %241, %cst_94 {dimension_numbers = #tpu.dot_dimension_numbers<[1], [0], [0], [1], [0, 0, 1, 1], [], []>} : vector<8x8xbf16>, vector<8x16xbf16>, vector<8x16xf32> -> vector<8x16xf32>
    %243 = vector.extract_strided_slice %238 {offsets = [8, 0], sizes = [8, 8], strides = [1, 1]} : vector<64x8xbf16> to vector<8x8xbf16>
    %244 = vector.extract_strided_slice %239 {offsets = [0, 16], sizes = [8, 16], strides = [1, 1]} : vector<8x64xbf16> to vector<8x16xbf16>
    %cst_95 = arith.constant dense<0.000000e+00> : vector<8x16xf32>
    %245 = tpu.matmul %243, %244, %cst_95 {dimension_numbers = #tpu.dot_dimension_numbers<[1], [0], [0], [1], [0, 0, 1, 1], [], []>} : vector<8x8xbf16>, vector<8x16xbf16>, vector<8x16xf32> -> vector<8x16xf32>
    %246 = vector.extract_strided_slice %238 {offsets = [16, 0], sizes = [8, 8], strides = [1, 1]} : vector<64x8xbf16> to vector<8x8xbf16>
    %247 = vector.extract_strided_slice %239 {offsets = [0, 32], sizes = [8, 16], strides = [1, 1]} : vector<8x64xbf16> to vector<8x16xbf16>
    %cst_96 = arith.constant dense<0.000000e+00> : vector<8x16xf32>
    %248 = tpu.matmul %246, %247, %cst_96 {dimension_numbers = #tpu.dot_dimension_numbers<[1], [0], [0], [1], [0, 0, 1, 1], [], []>} : vector<8x8xbf16>, vector<8x16xbf16>, vector<8x16xf32> -> vector<8x16xf32>
    %249 = vector.extract_strided_slice %238 {offsets = [24, 0], sizes = [8, 8], strides = [1, 1]} : vector<64x8xbf16> to vector<8x8xbf16>
    %250 = vector.extract_strided_slice %239 {offsets = [0, 48], sizes = [8, 16], strides = [1, 1]} : vector<8x64xbf16> to vector<8x16xbf16>
    %cst_97 = arith.constant dense<0.000000e+00> : vector<8x16xf32>
    %251 = tpu.matmul %249, %250, %cst_97 {dimension_numbers = #tpu.dot_dimension_numbers<[1], [0], [0], [1], [0, 0, 1, 1], [], []>} : vector<8x8xbf16>, vector<8x16xbf16>, vector<8x16xf32> -> vector<8x16xf32>
    %252 = tpu.concatenate %242, %245, %248, %251 in 1 : vector<8x16xf32>, vector<8x16xf32>, vector<8x16xf32>, vector<8x16xf32> -> vector<8x64xf32>
    %253 = vector.extract_strided_slice %197 {offsets = [8, 0], sizes = [8, 64], strides = [1, 1]} : vector<16x64xbf16> to vector<8x64xbf16>
    %254 = vector.extract_strided_slice %238 {offsets = [32, 0], sizes = [8, 8], strides = [1, 1]} : vector<64x8xbf16> to vector<8x8xbf16>
    %255 = vector.extract_strided_slice %253 {offsets = [0, 0], sizes = [8, 16], strides = [1, 1]} : vector<8x64xbf16> to vector<8x16xbf16>
    %cst_98 = arith.constant dense<0.000000e+00> : vector<8x16xf32>
    %256 = tpu.matmul %254, %255, %cst_98 {dimension_numbers = #tpu.dot_dimension_numbers<[1], [0], [0], [1], [0, 0, 1, 1], [], []>} : vector<8x8xbf16>, vector<8x16xbf16>, vector<8x16xf32> -> vector<8x16xf32>
    %257 = vector.extract_strided_slice %238 {offsets = [40, 0], sizes = [8, 8], strides = [1, 1]} : vector<64x8xbf16> to vector<8x8xbf16>
    %258 = vector.extract_strided_slice %253 {offsets = [0, 16], sizes = [8, 16], strides = [1, 1]} : vector<8x64xbf16> to vector<8x16xbf16>
    %cst_99 = arith.constant dense<0.000000e+00> : vector<8x16xf32>
    %259 = tpu.matmul %257, %258, %cst_99 {dimension_numbers = #tpu.dot_dimension_numbers<[1], [0], [0], [1], [0, 0, 1, 1], [], []>} : vector<8x8xbf16>, vector<8x16xbf16>, vector<8x16xf32> -> vector<8x16xf32>
    %260 = vector.extract_strided_slice %238 {offsets = [48, 0], sizes = [8, 8], strides = [1, 1]} : vector<64x8xbf16> to vector<8x8xbf16>
    %261 = vector.extract_strided_slice %253 {offsets = [0, 32], sizes = [8, 16], strides = [1, 1]} : vector<8x64xbf16> to vector<8x16xbf16>
    %cst_100 = arith.constant dense<0.000000e+00> : vector<8x16xf32>
    %262 = tpu.matmul %260, %261, %cst_100 {dimension_numbers = #tpu.dot_dimension_numbers<[1], [0], [0], [1], [0, 0, 1, 1], [], []>} : vector<8x8xbf16>, vector<8x16xbf16>, vector<8x16xf32> -> vector<8x16xf32>
    %263 = vector.extract_strided_slice %238 {offsets = [56, 0], sizes = [8, 8], strides = [1, 1]} : vector<64x8xbf16> to vector<8x8xbf16>
    %264 = vector.extract_strided_slice %253 {offsets = [0, 48], sizes = [8, 16], strides = [1, 1]} : vector<8x64xbf16> to vector<8x16xbf16>
    %cst_101 = arith.constant dense<0.000000e+00> : vector<8x16xf32>
    %265 = tpu.matmul %263, %264, %cst_101 {dimension_numbers = #tpu.dot_dimension_numbers<[1], [0], [0], [1], [0, 0, 1, 1], [], []>} : vector<8x8xbf16>, vector<8x16xbf16>, vector<8x16xf32> -> vector<8x16xf32>
    %266 = tpu.concatenate %256, %259, %262, %265 in 1 : vector<8x16xf32>, vector<8x16xf32>, vector<8x16xf32>, vector<8x16xf32> -> vector<8x64xf32>
    %267 = tpu.concatenate %252, %266 in 0 : vector<8x64xf32>, vector<8x64xf32> -> vector<16x64xf32>
    %268 = arith.truncf %267 : vector<16x64xf32> to vector<16x64xbf16>
    %c1_102 = arith.constant 1 : index
    %c0_103 = arith.constant 0 : index
    %c0_104 = arith.constant 0 : index
    %269 = vector.load %arg5[%c1_102, %c0_103, %c0_104] : memref<2x64x64xbf16, #tpu.memory_space<vmem>>, vector<1x64x64xbf16>
    %270 = vector.shape_cast %269 : vector<1x64x64xbf16> to vector<64x64xbf16>
    %cst_105 = arith.constant dense<0.000000e+00> : vector<16x64xf32>
    %271 = tpu.matmul %268, %270, %cst_105 {dimension_numbers = #tpu.dot_dimension_numbers<[1], [0], [0], [1], [0, 0, 1, 1], [], []>} : vector<16x64xbf16>, vector<64x64xbf16>, vector<16x64xf32> -> vector<16x64xf32>
    %c1_106 = arith.constant 1 : index
    %c0_107 = arith.constant 0 : index
    %c0_108 = arith.constant 0 : index
    %272 = vector.load %arg6[%c1_106, %c0_107, %c0_108] : memref<2x1x64xf32, #tpu.memory_space<vmem>>, vector<1x1x64xf32>
    %273 = vector.shape_cast %272 : vector<1x1x64xf32> to vector<1x64xf32>
    %274 = vector.broadcast %273 : vector<1x64xf32> to vector<16x64xf32>
    %275 = arith.addf %271, %274 : vector<16x64xf32>
    %276 = arith.addf %185, %275 : vector<16x64xf32>
    %c1_109 = arith.constant 1 : index
    %c0_110 = arith.constant 0 : index
    %c0_111 = arith.constant 0 : index
    %c0_112 = arith.constant 0 : index
    %277 = vector.load %arg11[%c1_109, %c0_110, %c0_111, %c0_112] : memref<2x4x1x64xf32, #tpu.memory_space<vmem>>, vector<1x1x1x64xf32>
    %278 = vector.shape_cast %277 : vector<1x1x1x64xf32> to vector<1x64xf32>
    %c1_113 = arith.constant 1 : index
    %c1_114 = arith.constant 1 : index
    %c0_115 = arith.constant 0 : index
    %c0_116 = arith.constant 0 : index
    %279 = vector.load %arg11[%c1_113, %c1_114, %c0_115, %c0_116] : memref<2x4x1x64xf32, #tpu.memory_space<vmem>>, vector<1x1x1x64xf32>
    %280 = vector.shape_cast %279 : vector<1x1x1x64xf32> to vector<1x64xf32>
    %cst_117 = arith.constant dense<0.000000e+00> : vector<16xf32>
    %281 = vector.multi_reduction <add>, %276, %cst_117 [1] : vector<16x64xf32> to vector<16xf32>
    %282 = vector.shape_cast %281 : vector<16xf32> to vector<16x1xf32>
    %cst_118 = arith.constant 6.400000e+01 : f32
    %283 = vector.broadcast %cst_118 : f32 to vector<16x1xf32>
    %284 = arith.divf %282, %283 : vector<16x1xf32>
    %285 = vector.broadcast %284 : vector<16x1xf32> to vector<16x64xf32>
    %286 = arith.subf %276, %285 : vector<16x64xf32>
    %287 = arith.mulf %286, %286 : vector<16x64xf32>
    %cst_119 = arith.constant dense<0.000000e+00> : vector<16xf32>
    %288 = vector.multi_reduction <add>, %287, %cst_119 [1] : vector<16x64xf32> to vector<16xf32>
    %289 = vector.shape_cast %288 : vector<16xf32> to vector<16x1xf32>
    %cst_120 = arith.constant 6.400000e+01 : f32
    %290 = vector.broadcast %cst_120 : f32 to vector<16x1xf32>
    %291 = arith.divf %289, %290 : vector<16x1xf32>
    %292 = vector.broadcast %284 : vector<16x1xf32> to vector<16x64xf32>
    %293 = arith.subf %276, %292 : vector<16x64xf32>
    %cst_121 = arith.constant 1.000000e-07 : f32
    %294 = vector.broadcast %cst_121 : f32 to vector<16x1xf32>
    %295 = arith.addf %291, %294 : vector<16x1xf32>
    %296 = math.rsqrt %295 : vector<16x1xf32>
    %297 = vector.broadcast %296 : vector<16x1xf32> to vector<16x64xf32>
    %298 = arith.mulf %293, %297 : vector<16x64xf32>
    %299 = vector.broadcast %278 : vector<1x64xf32> to vector<16x64xf32>
    %300 = arith.mulf %298, %299 : vector<16x64xf32>
    %301 = vector.broadcast %280 : vector<1x64xf32> to vector<16x64xf32>
    %302 = arith.addf %300, %301 : vector<16x64xf32>
    %303 = arith.truncf %302 : vector<16x64xf32> to vector<16x64xbf16>
    %c1_122 = arith.constant 1 : index
    %c0_123 = arith.constant 0 : index
    %c0_124 = arith.constant 0 : index
    %304 = vector.load %arg7[%c1_122, %c0_123, %c0_124] : memref<2x64x128xbf16, #tpu.memory_space<vmem>>, vector<1x64x128xbf16>
    %305 = vector.shape_cast %304 : vector<1x64x128xbf16> to vector<64x128xbf16>
    %cst_125 = arith.constant dense<0.000000e+00> : vector<16x128xf32>
    %306 = tpu.matmul %303, %305, %cst_125 {dimension_numbers = #tpu.dot_dimension_numbers<[1], [0], [0], [1], [0, 0, 1, 1], [], []>} : vector<16x64xbf16>, vector<64x128xbf16>, vector<16x128xf32> -> vector<16x128xf32>
    %c1_126 = arith.constant 1 : index
    %c0_127 = arith.constant 0 : index
    %c0_128 = arith.constant 0 : index
    %307 = vector.load %arg8[%c1_126, %c0_127, %c0_128] : memref<2x1x128xf32, #tpu.memory_space<vmem>>, vector<1x1x128xf32>
    %308 = vector.shape_cast %307 : vector<1x1x128xf32> to vector<1x128xf32>
    %309 = vector.broadcast %308 : vector<1x128xf32> to vector<16x128xf32>
    %310 = arith.addf %306, %309 : vector<16x128xf32>
    %311 = arith.mulf %310, %310 : vector<16x128xf32>
    %312 = arith.mulf %310, %311 : vector<16x128xf32>
    %cst_129 = arith.constant 4.471500e-02 : f32
    %313 = vector.broadcast %cst_129 : f32 to vector<16x128xf32>
    %314 = arith.mulf %313, %312 : vector<16x128xf32>
    %315 = arith.addf %310, %314 : vector<16x128xf32>
    %cst_130 = arith.constant 0.797884583 : f32
    %316 = vector.broadcast %cst_130 : f32 to vector<16x128xf32>
    %317 = arith.mulf %316, %315 : vector<16x128xf32>
    %318 = math.tanh %317 : vector<16x128xf32>
    %cst_131 = arith.constant 1.000000e+00 : f32
    %319 = vector.broadcast %cst_131 : f32 to vector<16x128xf32>
    %320 = arith.addf %319, %318 : vector<16x128xf32>
    %cst_132 = arith.constant 5.000000e-01 : f32
    %321 = vector.broadcast %cst_132 : f32 to vector<16x128xf32>
    %322 = arith.mulf %321, %320 : vector<16x128xf32>
    %323 = arith.mulf %310, %322 : vector<16x128xf32>
    %324 = arith.truncf %323 : vector<16x128xf32> to vector<16x128xbf16>
    %c1_133 = arith.constant 1 : index
    %c0_134 = arith.constant 0 : index
    %c0_135 = arith.constant 0 : index
    %325 = vector.load %arg9[%c1_133, %c0_134, %c0_135] : memref<2x128x64xbf16, #tpu.memory_space<vmem>>, vector<1x128x64xbf16>
    %326 = vector.shape_cast %325 : vector<1x128x64xbf16> to vector<128x64xbf16>
    %cst_136 = arith.constant dense<0.000000e+00> : vector<16x64xf32>
    %327 = tpu.matmul %324, %326, %cst_136 {dimension_numbers = #tpu.dot_dimension_numbers<[1], [0], [0], [1], [0, 0, 1, 1], [], []>} : vector<16x128xbf16>, vector<128x64xbf16>, vector<16x64xf32> -> vector<16x64xf32>
    %c1_137 = arith.constant 1 : index
    %c0_138 = arith.constant 0 : index
    %c0_139 = arith.constant 0 : index
    %328 = vector.load %arg10[%c1_137, %c0_138, %c0_139] : memref<2x1x64xf32, #tpu.memory_space<vmem>>, vector<1x1x64xf32>
    %329 = vector.shape_cast %328 : vector<1x1x64xf32> to vector<1x64xf32>
    %330 = vector.broadcast %329 : vector<1x64xf32> to vector<16x64xf32>
    %331 = arith.addf %327, %330 : vector<16x64xf32>
    %332 = arith.addf %302, %331 : vector<16x64xf32>
    %c1_140 = arith.constant 1 : index
    %c2_141 = arith.constant 2 : index
    %c0_142 = arith.constant 0 : index
    %c0_143 = arith.constant 0 : index
    %333 = vector.load %arg11[%c1_140, %c2_141, %c0_142, %c0_143] : memref<2x4x1x64xf32, #tpu.memory_space<vmem>>, vector<1x1x1x64xf32>
    %334 = vector.shape_cast %333 : vector<1x1x1x64xf32> to vector<1x64xf32>
    %c1_144 = arith.constant 1 : index
    %c3_145 = arith.constant 3 : index
    %c0_146 = arith.constant 0 : index
    %c0_147 = arith.constant 0 : index
    %335 = vector.load %arg11[%c1_144, %c3_145, %c0_146, %c0_147] : memref<2x4x1x64xf32, #tpu.memory_space<vmem>>, vector<1x1x1x64xf32>
    %336 = vector.shape_cast %335 : vector<1x1x1x64xf32> to vector<1x64xf32>
    %cst_148 = arith.constant dense<0.000000e+00> : vector<16xf32>
    %337 = vector.multi_reduction <add>, %332, %cst_148 [1] : vector<16x64xf32> to vector<16xf32>
    %338 = vector.shape_cast %337 : vector<16xf32> to vector<16x1xf32>
    %cst_149 = arith.constant 6.400000e+01 : f32
    %339 = vector.broadcast %cst_149 : f32 to vector<16x1xf32>
    %340 = arith.divf %338, %339 : vector<16x1xf32>
    %341 = vector.broadcast %340 : vector<16x1xf32> to vector<16x64xf32>
    %342 = arith.subf %332, %341 : vector<16x64xf32>
    %343 = arith.mulf %342, %342 : vector<16x64xf32>
    %cst_150 = arith.constant dense<0.000000e+00> : vector<16xf32>
    %344 = vector.multi_reduction <add>, %343, %cst_150 [1] : vector<16x64xf32> to vector<16xf32>
    %345 = vector.shape_cast %344 : vector<16xf32> to vector<16x1xf32>
    %cst_151 = arith.constant 6.400000e+01 : f32
    %346 = vector.broadcast %cst_151 : f32 to vector<16x1xf32>
    %347 = arith.divf %345, %346 : vector<16x1xf32>
    %348 = vector.broadcast %340 : vector<16x1xf32> to vector<16x64xf32>
    %349 = arith.subf %332, %348 : vector<16x64xf32>
    %cst_152 = arith.constant 1.000000e-07 : f32
    %350 = vector.broadcast %cst_152 : f32 to vector<16x1xf32>
    %351 = arith.addf %347, %350 : vector<16x1xf32>
    %352 = math.rsqrt %351 : vector<16x1xf32>
    %353 = vector.broadcast %352 : vector<16x1xf32> to vector<16x64xf32>
    %354 = arith.mulf %349, %353 : vector<16x64xf32>
    %355 = vector.broadcast %334 : vector<1x64xf32> to vector<16x64xf32>
    %356 = arith.mulf %354, %355 : vector<16x64xf32>
    %357 = vector.broadcast %336 : vector<1x64xf32> to vector<16x64xf32>
    %358 = arith.addf %356, %357 : vector<16x64xf32>
    %c0_153 = arith.constant 0 : index
    %c0_154 = arith.constant 0 : index
    %359 = vector.load %arg2[%c0_153, %c0_154] : memref<16x1xf32, #tpu.memory_space<vmem>>, vector<16x1xf32>
    %360 = vector.broadcast %359 : vector<16x1xf32> to vector<16x64xf32>
    %361 = arith.mulf %358, %360 : vector<16x64xf32>
    %362 = vector.extract_strided_slice %361 {offsets = [0, 0], sizes = [8, 64], strides = [1, 1]} : vector<16x64xf32> to vector<8x64xf32>
    %cst_155 = arith.constant dense<0.000000e+00> : vector<64xf32>
    %363 = vector.multi_reduction <add>, %362, %cst_155 [0] : vector<8x64xf32> to vector<64xf32>
    %364 = vector.shape_cast %363 : vector<64xf32> to vector<1x64xf32>
    %365 = vector.extract_strided_slice %361 {offsets = [8, 0], sizes = [8, 64], strides = [1, 1]} : vector<16x64xf32> to vector<8x64xf32>
    %cst_156 = arith.constant dense<0.000000e+00> : vector<64xf32>
    %366 = vector.multi_reduction <add>, %365, %cst_156 [0] : vector<8x64xf32> to vector<64xf32>
    %367 = vector.shape_cast %366 : vector<64xf32> to vector<1x64xf32>
    %368 = tpu.concatenate %364, %367 in 0 : vector<1x64xf32>, vector<1x64xf32> -> vector<2x64xf32>
    %cst_157 = arith.constant dense<0.000000e+00> : vector<2xf32>
    %369 = vector.multi_reduction <add>, %1, %cst_157 [1] : vector<2x8xf32> to vector<2xf32>
    %370 = vector.shape_cast %369 : vector<2xf32> to vector<2x1xf32>
    %cst_158 = arith.constant 9.99999971E-10 : f32
    %371 = vector.broadcast %cst_158 : f32 to vector<2x1xf32>
    %372 = arith.maximumf %370, %371 : vector<2x1xf32>
    %373 = vector.broadcast %372 : vector<2x1xf32> to vector<2x64xf32>
    %374 = arith.divf %368, %373 : vector<2x64xf32>
    %c0_159 = arith.constant 0 : index
    %c0_160 = arith.constant 0 : index
    %375 = vector.load %arg12[%c0_159, %c0_160] : memref<2x64xf32, #tpu.memory_space<vmem>>, vector<2x64xf32>
    tpu.vector_store %arg12[%c0_159, %c0_160], %374 {strides = array<i32>} : memref<2x64xf32, #tpu.memory_space<vmem>>, vector<2x64xf32>,
    return
  }
}

</mosaic_0001>

<bundles_post_ra>
// kernel: transformer_forward.1
= control target key start
LH: loop header
LB: loop body
LE: loop exit
PB: predicated region body
PF: predicated region fallthrough
CT: control target
= control target key end

     0   :  { %v3715_v2 = vmov 0   ;;  %vm117_vm0 = vcmask 523264   ;;  %s4473_s0 = inlined_call_operand.vmem [shape: f32[16,64], index: 0, kind: input, shape index: {}]   ;;  %s4474_s1 = inlined_call_operand.vmem [shape: f32[2,8], index: 1, kind: input, shape index: {}]   ;;  %s4475_s2 = inlined_call_operand.vmem [shape: f32[16,1], index: 2, kind: input, shape index: {}]   ;;  %s4476_s3 = inlined_call_operand.vmem [shape: bf16[2,64,192], index: 3, kind: input, shape index: {}]   ;;  %s4477_s4 = inlined_call_operand.vmem [shape: f32[2,1,192], index: 4, kind: input, shape index: {}]   ;;  %s4478_s5 = inlined_call_operand.vmem [shape: bf16[2,64,64], index: 5, kind: input, shape index: {}]   ;;  %s4479_s6 = inlined_call_operand.vmem [shape: f32[2,1,64], index: 6, kind: input, shape index: {}]   ;;  %s4480_s7 = inlined_call_operand.vmem [shape: bf16[2,64,128], index: 7, kind: input, shape index: {}]   ;;  %s4481_s8 = inlined_call_operand.vmem [shape: f32[2,1,128], index: 8, kind: input, shape index: {}]   ;;  %s4482_s9 = inlined_call_operand.vmem [shape: bf16[2,128,64], index: 9, kind: input, shape index: {}]   ;;  %s4483_s10 = inlined_call_operand.vmem [shape: f32[2,1,64], index: 10, kind: input, shape index: {}]   ;;  %s4484_s11 = inlined_call_operand.vmem [shape: f32[2,4,1,64], index: 11, kind: input, shape index: {}]   ;;  %s4485_s12 = inlined_call_operand.hbm [shape: f32[2,64], index: 12, kind: output, shape index: {}]  }
   0x1   :  { %v3544_v0 = vld [vmem:[%s4476_s3 + $0x4] ss:$8 sps:$4 sm:$0xff]   ;;  %v3546_v1 = vld [vmem:[%s4476_s3] ss:$8 sps:$4 sm:$0xff]   ;;  %153 = vmatprep.mubr.bf16.mxu1 %v3715_v2  ;;  %3542 = vset.pattern.permute.xlu0 %v3715_v2  ;;  %v3547_v3 = vld [vmem:[%s4476_s3 + $0x14] ss:$8 sps:$4 sm:$0xff]  }
   0x2   :  { %121 = vmatprep.subr.bf16.mxu1 %v3544_v0  ;;  %3543 = vset.pattern.permute.xlu1 %v3715_v2  ;;  %v3549_v4 = vld [vmem:[%s4476_s3 + $0x10] ss:$8 sps:$4 sm:$0xff]   ;;  %v3550_v5 = vld [vmem:[%s4476_s3 + $0x24] ss:$8 sps:$4 sm:$0xff]   ;;  %v3552_v6 = vld [vmem:[%s4476_s3 + $0x20] ss:$8 sps:$4 sm:$0xff]  }
   0x3   :  { %122 = vmatpush1.bf16.msra.mxu1 %v3546_v1  ;;  %v3553_v7 = vld [vmem:[%s4476_s3 + $0x34] ss:$8 sps:$4 sm:$0xff]   ;;  %v3555_v8 = vld [vmem:[%s4476_s3 + $0x30] ss:$8 sps:$4 sm:$0xff]   ;;  %v3821_v9 = vld [vmem:[%s4473_s0] sm:$0xff] }
   0x4   :  { %123 = vmatprep.subr.bf16.mxu1 %v3547_v3  ;;  %v3826_v10 = vld [vmem:[%s4473_s0 + $0x8] sm:$0xff] }
   0x5   :  { %v56_v11 = vpack.c.bf16 %v3826_v10, %v3821_v9 }
   0x7   :  { %124 = vmatpush1.bf16.msra.mxu1 %v3549_v4 }
   0x8   :  { %125 = vmatprep.subr.bf16.mxu1 %v3550_v5 }
   0xb   :  { %126 = vmatpush1.bf16.msra.mxu1 %v3552_v6 }
   0xc   :  { %127 = vmatprep.subr.bf16.mxu1 %v3553_v7 }
   0xf   :  { %128 = vmatpush1.bf16.msra.mxu1 %v3555_v8 }
  0x12   :  { %2976 = vmatmul.mubr.msk.bf16.vlgmr.msra.gmra.mrb[0].mxu1 %vm117_vm0, %v56_v11 }
  0x13   :  { %17 = vsyncpa [#allocation3], 0  ;;  %v48_v12 = vlaneseq  ;;  %v3716_v14 = vmov 0.0   ;;  %v65_v16 = vld [vmem:[%s4477_s4] sm:$0x3]  ;;  %vm3717_vm1 = vmmov 0  }
  0x14   :  { %3221 = vmatprep.subr.bf16.mxu1 %v3716_v14  ;;  %3233 = vmatprep.subr.bf16.mxu0 %v3716_v14  ;;  %s3718_s24 = smov 112   ;;  %s3719_s25 = smov 64   ;;  %vm169_vm2 = vcmask 130048   ;;  %vm669_vm3 = vcmask 1043456   ;;  %v45_v54 = vld [vmem:[%s4474_s1] sm:$0x3] }
  0x15   :  { %v49_v13 = vshrl.u32 %v48_v12, 7  ;;  %3223 = vmatprep.mubr.msk.bf16.mxu1 %vm3717_vm1, %v3716_v14  ;;  %3235 = vmatprep.mubr.msk.bf16.mxu0 %vm3717_vm1, %v3716_v14  ;;  %s3720_s26 = smov 32   ;;  %s3721_s27 = smov 48   ;;  %v2967_v55 = vadd.f32 -1.0, %v45_v54  ;;  %vm573_vm4 = vcmask 64512   ;;  %vm875_vm5 = vcmask 261120  }
  0x16   :  { %s3722_s28 = smov 96   ;;  %s3723_s29 = smov 16   ;;  %vm877_vm6 = vcmask 392192   ;;  %vm2944_vm7 = vcmask 58368   ;;  %vm2942_vm8 = vcmask 1040384   ;;  %vm2951_vm9 = vcmask 517120  }
  0x17   :  { %v3833_v15 = vsub.s32 0, %v49_v13  ;;  %v3838_v17 = vsub.s32 1, %v49_v13  ;;  %s3724_s30 = smov 80   ;;  %v47_v56 = vmul.f32 1e+09, %v2967_v55 }
  0x19   :  { %v70_v18 = vrot.slane %v65_v16, %v3833_v15  ;;  %v74_v20 = vrot.slane %v65_v16, %v3838_v17  ;;  %v3909_v57 = vrot.slane %v47_v56, %v3833_v15  ;;  %v3916_v8 = vrot.slane %v47_v56, %v3838_v17 }
  0xe5   :  { %v155_v19 = vpop.f32.mrb[0].mxu1 }
  0xe6   :  { %v157_v21 = vpop.f32.mrb[1].mxu1  ;;  %v156_v23 = vadd.f32 %v155_v19, %v70_v18 }
  0xe7   :  { %v159_v22 = vpop.f32.mrb[2].mxu1  ;;  %v158_v26 = vadd.f32 %v157_v21, %v74_v20 }
  0xe8   :  { %v160_v24 = vadd.f32 %v159_v22, %v70_v18  ;;  %v161_v25 = vpop.f32.mrb[3].mxu1 }
  0xe9   :  { %v162_v27 = vadd.f32 %v161_v25, %v74_v20 }
  0xea   :  { %v164_v28 = vpack.c.bf16 %v160_v24, %v156_v23 }
  0xeb   :  { %v3846_v29 = vpack.c.bf16 %v162_v27, %v158_v26 }
  0xec   :  { %216 = vrot.lane.b32.xlu1 %v164_v28, %s3718_s24  ;;  %167 = vrot.lane.b32.xlu0 %v164_v28, %s3719_s25  ;;  %v366_v30 = vrot.slane %v164_v28, 4 }
  0xed   :  { %v671_v50 = vsel %vm669_vm3, %v3846_v29, 0 }
  0xf0   :  { %268 = vrot.lane.b32.xlu1 %v164_v28, %s3720_s26  ;;  %218 = vrot.lane.b32.xlu0 %v164_v28, %s3721_s27 }
  0xf4   :  { %266 = vrot.lane.b32.xlu1 %v164_v28, %s3722_s28  ;;  %318 = vrot.lane.b32.xlu0 %v164_v28, %s3723_s29 }
  0xf8   :  { %316 = vrot.lane.b32.xlu0 %v164_v28, %s3724_s30  ;;  %367 = vrot.lane.b32.xlu1 %v366_v30, %s3719_s25 }
  0xfc   :  { %417 = vrot.lane.b32.xlu0 %v366_v30, %s3721_s27  ;;  %415 = vrot.lane.b32.xlu1 %v366_v30, %s3718_s24 }
 0x100   :  { %467 = vrot.lane.b32.xlu0 %v366_v30, %s3720_s26  ;;  %517 = vrot.lane.b32.xlu1 %v366_v30, %s3723_s29 }
 0x104   :  { %465 = vrot.lane.b32.xlu0 %v366_v30, %s3722_s28  ;;  %515 = vrot.lane.b32.xlu1 %v366_v30, %s3724_s30 }
 0x15e   :  { %v217_v31 = vpop.permute.xlu1 %216  ;;  %v168_v32 = vpop.permute.xlu0 %167 }
 0x15f   :  { %v174_v33 = vsel %vm169_vm2, %v168_v32, 0 }
 0x160   :  { %3222 = vmatpush3.bf16.xpose.msra.mxu1 %v174_v33 }
 0x161   :  { %3227 = vmatprep.subr.bf16.mxu1 %v3716_v14 }
 0x162   :  { %v269_v34 = vpop.permute.xlu1 %268  ;;  %v219_v35 = vpop.permute.xlu0 %218 }
 0x163   :  { %v274_v36 = vsel %vm169_vm2, %v269_v34, 0  ;;  %v224_v39 = vsel %vm169_vm2, %v219_v35, 0 }
 0x164   :  { %3234 = vmatpush3.bf16.xpose.msra.mxu0 %v274_v36 }
 0x165   :  { %3245 = vmatprep.subr.bf16.mxu0 %v3716_v14 }
 0x166   :  { %v267_v37 = vpop.permute.xlu1 %266  ;;  %v319_v38 = vpop.permute.xlu0 %318 }
 0x167   :  { %3224 = vmatmul.mubr.msk.bf16.vlgmr.msra.gmra.mrb[4].mxu1 %vm169_vm2, %v164_v28  ;;  %v324_v44 = vsel %vm169_vm2, %v319_v38, 0 }
 0x168   :  { %3228 = vmatpush3.bf16.xpose.msra.mxu1 %v224_v39  ;;  %3229 = vmatprep.mubr.msk.bf16.mxu1 %vm3717_vm1, %v3716_v14 }
 0x169   :  { %3239 = vmatprep.subr.bf16.mxu1 %v3716_v14 }
 0x16a   :  { %v317_v40 = vpop.permute.xlu0 %316  ;;  %v368_v41 = vpop.permute.xlu1 %367 }
 0x16b   :  { %v373_v42 = vsel %vm169_vm2, %v368_v41, 0  ;;  %3236 = vmatmul.mubr.msk.bf16.vlgmr.msra.gmra.mrb[0].mxu0 %vm169_vm2, %v267_v37 }
 0x16c   :  { %3246 = vmatpush3.bf16.xpose.msra.mxu0 %v373_v42  ;;  %3247 = vmatprep.mubr.msk.bf16.mxu0 %vm3717_vm1, %v3716_v14 }
 0x16d   :  { %3257 = vmatprep.subr.bf16.mxu0 %v3716_v14 }
 0x16e   :  { %v418_v43 = vpop.permute.xlu0 %417  ;;  %v416_v47 = vpop.permute.xlu1 %415 }
 0x16f   :  { %3230 = vmatmul.mubr.msk.bf16.vlgmr.msra.gmra.mrb[8].mxu1 %vm169_vm2, %v217_v31  ;;  %v423_v48 = vsel %vm169_vm2, %v418_v43, 0 }
 0x170   :  { %3240 = vmatpush3.bf16.xpose.msra.mxu1 %v324_v44  ;;  %3241 = vmatprep.mubr.msk.bf16.mxu1 %vm3717_vm1, %v3716_v14 }
 0x171   :  { %3251 = vmatprep.subr.bf16.mxu1 %v3716_v14 }
 0x172   :  { %v468_v45 = vpop.permute.xlu0 %467  ;;  %v518_v51 = vpop.permute.xlu1 %517 }
 0x173   :  { %v473_v46 = vsel %vm169_vm2, %v468_v45, 0  ;;  %3248 = vmatmul.mubr.msk.bf16.vlgmr.msra.gmra.mrb[4].mxu0 %vm169_vm2, %v366_v30  ;;  %v523_v52 = vsel %vm169_vm2, %v518_v51, 0 }
 0x174   :  { %3258 = vmatpush3.bf16.xpose.msra.mxu0 %v473_v46  ;;  %3259 = vmatprep.mubr.msk.bf16.mxu0 %vm3717_vm1, %v3716_v14 }
 0x175   :  { %3269 = vmatprep.subr.bf16.mxu0 %v3716_v14 }
 0x176   :  { %v466_v49 = vpop.permute.xlu0 %465  ;;  %v516_v53 = vpop.permute.xlu1 %515 }
 0x177   :  { %3242 = vmatmul.mubr.msk.bf16.vlgmr.msra.gmra.mrb[12].mxu1 %vm169_vm2, %v317_v40 }
 0x178   :  { %3252 = vmatpush3.bf16.xpose.msra.mxu1 %v423_v48  ;;  %3253 = vmatprep.mubr.msk.bf16.mxu1 %vm3717_vm1, %v3716_v14 }
 0x179   :  { %3263 = vmatprep.subr.bf16.mxu1 %v3716_v14 }
 0x17b   :  { %3260 = vmatmul.mubr.msk.bf16.vlgmr.msra.gmra.mrb[8].mxu0 %vm169_vm2, %v466_v49 }
 0x17c   :  { %3270 = vmatpush3.bf16.msra.mxu0 %v671_v50  ;;  %3271 = vmatprep.mubr.msk.bf16.mxu0 %vm3717_vm1, %v3716_v14 }
 0x17d   :  { %3281 = vmatprep.subr.bf16.mxu0 %v3716_v14 }
 0x17f   :  { %3254 = vmatmul.mubr.msk.bf16.vlgmr.msra.gmra.mrb[16].mxu1 %vm169_vm2, %v416_v47 }
 0x180   :  { %3264 = vmatpush3.bf16.xpose.msra.mxu1 %v523_v52  ;;  %3265 = vmatprep.mubr.msk.bf16.mxu1 %vm3717_vm1, %v3716_v14 }
 0x181   :  { %3275 = vmatprep.subr.bf16.mxu1 %v3716_v14 }
 0x187   :  { %3266 = vmatmul.mubr.msk.bf16.vlgmr.msra.gmra.mrb[20].mxu1 %vm169_vm2, %v516_v53 }
 0x188   :  { %3277 = vmatprep.mubr.msk.bf16.mxu1 %vm3717_vm1, %v3716_v14 }
 0x23a   :  { %v210_v58 = vpop.f32.mrb[4].mxu1 }
 0x23b   :  { %v565_v59 = vadd.f32 %v210_v58, %v3909_v57  ;;  %v3225_v60 = vpop.f32.mrb[5].mxu1 }
 0x23c   :  { %v213_v61 = vpop.f32.mrb[6].mxu1 }
 0x23d   :  { %v3226_v62 = vpop.f32.mrb[7].mxu1  ;;  %v574_v63 = vsel %vm573_vm4, %v565_v59, -inf }
 0x23e   :  { %v310_v0 = vpop.f32.mrb[0].mxu0  ;;  %575 = vmax.xlane.f32.xlu0 %v574_v63 }
 0x23f   :  { %v567_v1 = vadd.f32 %v310_v0, %v3909_v57  ;;  %v3237_v3 = vpop.f32.mrb[1].mxu0 }
 0x240   :  { %v313_v4 = vpop.f32.mrb[2].mxu0 }
 0x241   :  { %v3238_v5 = vpop.f32.mrb[3].mxu0  ;;  %v580_v6 = vsel %vm573_vm4, %v567_v1, -inf }
 0x242   :  { %v260_v7 = vpop.f32.mrb[8].mxu1  ;;  %581 = vmax.xlane.f32.xlu0 %v580_v6 }
 0x243   :  { %v566_v11 = vadd.f32 %v260_v7, %v3909_v57  ;;  %v3231_v12 = vpop.f32.mrb[9].mxu1 }
 0x244   :  { %v263_v13 = vpop.f32.mrb[10].mxu1 }
 0x245   :  { %v3232_v16 = vpop.f32.mrb[11].mxu1  ;;  %v577_v18 = vsel %vm573_vm4, %v566_v11, -inf }
 0x246   :  { %578 = vmax.xlane.f32.xlu1 %v577_v18  ;;  %v409_v19 = vpop.f32.mrb[4].mxu0 }
 0x247   :  { %v569_v20 = vadd.f32 %v409_v19, %v3916_v8  ;;  %v3249_v21 = vpop.f32.mrb[5].mxu0 }
 0x248   :  { %v412_v22 = vpop.f32.mrb[6].mxu0 }
 0x249   :  { %v3250_v23 = vpop.f32.mrb[7].mxu0  ;;  %v586_v24 = vsel %vm573_vm4, %v569_v20, -inf  ;;  %v879_v22 = vrot.slane %v3846_v29, 4 }
 0x24a   :  { %v360_v25 = vpop.f32.mrb[12].mxu1  ;;  %587 = vmax.xlane.f32.xlu1 %v586_v24 }
 0x24b   :  { %v568_v26 = vadd.f32 %v360_v25, %v3909_v57  ;;  %v3243_v27 = vpop.f32.mrb[13].mxu1 }
 0x24c   :  { %v363_v28 = vpop.f32.mrb[14].mxu1 }
 0x24d   :  { %v3244_v30 = vpop.f32.mrb[15].mxu1  ;;  %v583_v31 = vsel %vm573_vm4, %v568_v26, -inf }
 0x24e   :  { %584 = vmax.xlane.f32.xlu0 %v583_v31  ;;  %v509_v32 = vpop.f32.mrb[8].mxu0 }
 0x24f   :  { %v3925_v33 = vadd.f32 %v509_v32, %v3916_v8  ;;  %v3261_v34 = vpop.f32.mrb[9].mxu0 }
 0x250   :  { %v512_v35 = vpop.f32.mrb[10].mxu0 }
 0x251   :  { %v3262_v36 = vpop.f32.mrb[11].mxu0  ;;  %v592_v37 = vsel %vm573_vm4, %v3925_v33, -inf }
 0x252   :  { %593 = vmax.xlane.f32.xlu1 %v592_v37  ;;  %v459_v38 = vpop.f32.mrb[16].mxu1 }
 0x253   :  { %v3930_v39 = vadd.f32 %v459_v38, %v3916_v8  ;;  %v3255_v40 = vpop.f32.mrb[17].mxu1 }
 0x254   :  { %v462_v41 = vpop.f32.mrb[18].mxu1 }
 0x255   :  { %v3256_v42 = vpop.f32.mrb[19].mxu1  ;;  %v589_v43 = vsel %vm573_vm4, %v3930_v39, -inf }
 0x256   :  { %590 = vmax.xlane.f32.xlu0 %v589_v43 }
 0x25a   :  { %v559_v44 = vpop.f32.mrb[20].mxu1 }
 0x25b   :  { %v572_v45 = vadd.f32 %v559_v44, %v3916_v8  ;;  %v3267_v46 = vpop.f32.mrb[21].mxu1 }
 0x25c   :  { %v562_v47 = vpop.f32.mrb[22].mxu1 }
 0x25d   :  { %v3268_v48 = vpop.f32.mrb[23].mxu1  ;;  %v595_v49 = vsel %vm573_vm4, %v572_v45, -inf }
 0x25e   :  { %596 = vmax.xlane.f32.xlu0 %v595_v49 }
 0x263   :  { %716 = vrot.lane.b32.xlu1 %v3846_v29, %s3718_s24 }
 0x2cb   :  { %v576_v50 = vpop.xlane.xlu0 %575 }
 0x2cc   :  { %v598_v51 = vsub.f32 %v565_v59, %v576_v50 }
 0x2ce   :  { %v606_v52 = vmul.f32 1.442695, %v598_v51 }
 0x2cf   :  { %v582_v53 = vpop.xlane.xlu0 %581 }
 0x2d0   :  { %3600 = vpow2.f32 %v606_v52  ;;  %v600_v54 = vsub.f32 %v567_v1, %v582_v53 }
 0x2d2   :  { %v610_v55 = vmul.f32 1.442695, %v600_v54 }
 0x2d3   :  { %v579_v56 = vpop.xlane.xlu1 %578 }
 0x2d4   :  { %3602 = vpow2.f32 %v610_v55  ;;  %v599_v58 = vsub.f32 %v566_v11, %v579_v56 }
 0x2d6   :  { %v608_v60 = vmul.f32 1.442695, %v599_v58 }
 0x2d7   :  { %v588_v61 = vpop.xlane.xlu1 %587 }
 0x2d8   :  { %3604 = vpow2.f32 %v608_v60  ;;  %v602_v62 = vsub.f32 %v569_v20, %v588_v61  ;;  %v884_v60 = vsel %vm669_vm3, %v879_v22, 0 }
 0x2da   :  { %v3938_v63 = vpop.eup %3600  ;;  %v614_v0 = vmul.f32 1.442695, %v602_v62 }
 0x2db   :  { %v585_v3 = vpop.xlane.xlu0 %584  ;;  %v622_v4 = vsel %vm573_vm4, %v3938_v63, 0.0 }
 0x2dc   :  { %3606 = vpow2.f32 %v614_v0  ;;  %v601_v59 = vsub.f32 %v568_v26, %v585_v3  ;;  %623 = vadd.xlane.f32.xlu1 %v622_v4 }
 0x2de   :  { %v3942_v5 = vpop.eup %3602  ;;  %v612_v1 = vmul.f32 1.442695, %v601_v59 }
 0x2df   :  { %v594_v6 = vpop.xlane.xlu1 %593  ;;  %v628_v7 = vsel %vm573_vm4, %v3942_v5, 0.0 }
 0x2e0   :  { %3608 = vpow2.f32 %v612_v1  ;;  %629 = vadd.xlane.f32.xlu1 %v628_v7  ;;  %v604_v24 = vsub.f32 %v3925_v33, %v594_v6 }
 0x2e2   :  { %v3605_v11 = vpop.eup %3604  ;;  %v618_v27 = vmul.f32 1.442695, %v604_v24  ;;  %v3556_v24 = vld [vmem:[%s4478_s5] sm:$0xff]  }
 0x2e3   :  { %v717_v12 = vpop.permute.xlu1 %716  ;;  %v625_v13 = vsel %vm573_vm4, %v3605_v11, 0.0  ;;  %v591_v23 = vpop.xlane.xlu0 %590 }
 0x2e4   :  { %v722_v16 = vsel %vm669_vm3, %v717_v12, 0  ;;  %626 = vadd.xlane.f32.xlu0 %v625_v13  ;;  %v603_v25 = vsub.f32 %v3930_v39, %v591_v23  ;;  %3610 = vpow2.f32 %v618_v27 }
 0x2e5   :  { %3276 = vmatpush3.bf16.msra.mxu1 %v722_v16 }
 0x2e6   :  { %v3948_v18 = vpop.eup %3606  ;;  %3287 = vmatprep.subr.bf16.mxu1 %v3716_v14  ;;  %v616_v28 = vmul.f32 1.442695, %v603_v25 }
 0x2e7   :  { %v634_v19 = vsel %vm573_vm4, %v3948_v18, 0.0 }
 0x2e8   :  { %635 = vadd.xlane.f32.xlu1 %v634_v19  ;;  %3612 = vpow2.f32 %v616_v28 }
 0x2ea   :  { %v3609_v20 = vpop.eup %3608 }
 0x2eb   :  { %v631_v21 = vsel %vm573_vm4, %v3609_v20, 0.0  ;;  %v597_v26 = vpop.xlane.xlu0 %596 }
 0x2ec   :  { %632 = vadd.xlane.f32.xlu0 %v631_v21  ;;  %v605_v30 = vsub.f32 %v572_v45, %v597_v26 }
 0x2ee   :  { %v620_v31 = vmul.f32 1.442695, %v605_v30  ;;  %v3962_v32 = vpop.eup %3610 }
 0x2ef   :  { %v640_v33 = vsel %vm573_vm4, %v3962_v32, 0.0 }
 0x2f0   :  { %3614 = vpow2.f32 %v620_v31 }
 0x2f2   :  { %v3964_v34 = vpop.eup %3612 }
 0x2f9   :  { %814 = vrot.lane.b32.xlu1 %v3846_v29, %s3724_s30 }
 0x2fa   :  { %v3970_v35 = vpop.eup %3614 }
 0x2fb   :  { %v643_v36 = vsel %vm573_vm4, %v3970_v35, 0.0 }
 0x2fd   :  { %928 = vrot.lane.b32.xlu1 %v879_v22, %s3718_s24 }
 0x302   :  { %764 = vrot.lane.b32.xlu0 %v3846_v29, %s3722_s28  ;;  %v637_v29 = vsel %vm573_vm4, %v3964_v34, 0.0 }
 0x321   :  { %638 = vadd.xlane.f32.xlu0 %v637_v29  ;;  %641 = vadd.xlane.f32.xlu1 %v640_v33 }
 0x325   :  { %644 = vadd.xlane.f32.xlu0 %v643_v36 }
 0x332   :  { %1026 = vrot.lane.b32.xlu1 %v879_v22, %s3724_s30 }
 0x33b   :  { %976 = vrot.lane.b32.xlu0 %v879_v22, %s3722_s28 }
 0x369   :  { %v624_v37 = vpop.xlane.xlu1 %623 }
 0x36a   :  { %3616 = vrcp.f32 %v624_v37 }
 0x36d   :  { %v630_v39 = vpop.xlane.xlu1 %629 }
 0x371   :  { %v627_v38 = vpop.xlane.xlu0 %626 }
 0x372   :  { %3618 = vrcp.f32 %v627_v38 }
 0x373   :  { %3620 = vrcp.f32 %v630_v39 }
 0x374   :  { %v3617_v41 = vpop.eup %3616 }
 0x375   :  { %v636_v42 = vpop.xlane.xlu1 %635  ;;  %v654_v44 = vmul.f32 %v3617_v41, %v3938_v63  ;;  %v3557_v41 = vld [vmem:[%s4478_s5 + $0x8] sm:$0xff]  }
 0x379   :  { %v633_v40 = vpop.xlane.xlu0 %632  ;;  %v815_v48 = vpop.permute.xlu1 %814 }
 0x37a   :  { %3622 = vrcp.f32 %v633_v40  ;;  %v820_v52 = vsel %vm669_vm3, %v815_v48, 0 }
 0x37b   :  { %3624 = vrcp.f32 %v636_v42  ;;  %v3558_v42 = vld [vmem:[%s4478_s5 + $0x10] sm:$0xff]  }
 0x37c   :  { %v3619_v43 = vpop.eup %3618 }
 0x37d   :  { %v655_v45 = vmul.f32 %v3619_v43, %v3605_v11  ;;  %v765_v46 = vpop.permute.xlu0 %764  ;;  %v3621_v51 = vpop.eup %3620 }
 0x37e   :  { %v770_v49 = vsel %vm669_vm3, %v765_v46, 0  ;;  %v656_v54 = vmul.f32 %v3621_v51, %v3942_v5  ;;  %v929_v58 = vpop.permute.xlu1 %928 }
 0x37f   :  { %v662_v47 = vpack.c.bf16 %v655_v45, %v654_v44  ;;  %v934_v62 = vsel %vm669_vm3, %v929_v58, 0  ;;  %v3559_v45 = vld [vmem:[%s4478_s5 + $0x18] sm:$0xff]  }
 0x381   :  { %3272 = vmatmul.mubr.msk.bf16.vlgmr.msra.gmra.mrb[12].mxu0 %vm573_vm4, %v662_v47  ;;  %v714_v50 = vrot.slane %v662_v47, 4 }
 0x382   :  { %3282 = vmatpush3.bf16.msra.mxu0 %v770_v49  ;;  %3283 = vmatprep.mubr.msk.bf16.mxu0 %vm3717_vm1, %v3716_v14 }
 0x383   :  { %3278 = vmatmul.mubr.msk.bf16.vlgmr.msra.gmra.mrb[24].mxu1 %vm573_vm4, %v714_v50  ;;  %3293 = vmatprep.subr.bf16.mxu0 %v3716_v14 }
 0x384   :  { %v3623_v53 = vpop.eup %3622  ;;  %3288 = vmatpush3.bf16.msra.mxu1 %v820_v52  ;;  %3289 = vmatprep.mubr.msk.bf16.mxu1 %vm3717_vm1, %v3716_v14 }
 0x385   :  { %v657_v55 = vmul.f32 %v3623_v53, %v3609_v20  ;;  %3299 = vmatprep.subr.bf16.mxu1 %v3716_v14  ;;  %v3625_v4 = vpop.eup %3624 }
 0x386   :  { %v658_v5 = vmul.f32 %v3625_v4, %v3948_v18 }
 0x387   :  { %v663_v56 = vpack.c.bf16 %v657_v55, %v656_v54 }
 0x389   :  { %3284 = vmatmul.mubr.msk.bf16.vlgmr.msra.gmra.mrb[16].mxu0 %vm573_vm4, %v663_v56  ;;  %v813_v61 = vrot.slane %v663_v56, 4 }
 0x38a   :  { %3294 = vmatpush3.bf16.msra.mxu0 %v884_v60  ;;  %3295 = vmatprep.mubr.msk.bf16.mxu0 %vm3717_vm1, %v3716_v14 }
 0x38b   :  { %3290 = vmatmul.mubr.msk.bf16.vlgmr.msra.gmra.mrb[28].mxu1 %vm573_vm4, %v813_v61  ;;  %3305 = vmatprep.subr.bf16.mxu0 %v3716_v14 }
 0x38c   :  { %3300 = vmatpush3.bf16.msra.mxu1 %v934_v62  ;;  %3301 = vmatprep.mubr.msk.bf16.mxu1 %vm3717_vm1, %v3716_v14 }
 0x38d   :  { %3311 = vmatprep.subr.bf16.mxu1 %v3716_v14 }
 0x3ae   :  { %v639_v63 = vpop.xlane.xlu0 %638  ;;  %v642_v0 = vpop.xlane.xlu1 %641 }
 0x3af   :  { %3626 = vrcp.f32 %v639_v63 }
 0x3b0   :  { %3628 = vrcp.f32 %v642_v0 }
 0x3b2   :  { %v645_v3 = vpop.xlane.xlu0 %644  ;;  %v1027_v13 = vpop.permute.xlu1 %1026 }
 0x3b3   :  { %3630 = vrcp.f32 %v645_v3  ;;  %v1032_v21 = vsel %vm669_vm3, %v1027_v13, 0 }
 0x3b6   :  { %v977_v6 = vpop.permute.xlu0 %976 }
 0x3b7   :  { %v982_v19 = vsel %vm669_vm3, %v977_v6, 0 }
 0x3b9   :  { %v3627_v59 = vpop.eup %3626 }
 0x3ba   :  { %v659_v1 = vmul.f32 %v3627_v59, %v3964_v34  ;;  %v3629_v7 = vpop.eup %3628 }
 0x3bb   :  { %v660_v18 = vmul.f32 %v3629_v7, %v3962_v32 }
 0x3bc   :  { %v664_v11 = vpack.c.bf16 %v659_v1, %v658_v5 }
 0x3bd   :  { %v3631_v12 = vpop.eup %3630 }
 0x3be   :  { %v661_v16 = vmul.f32 %v3631_v12, %v3970_v35  ;;  %3296 = vmatmul.mubr.msk.bf16.vlgmr.msra.gmra.mrb[20].mxu0 %vm573_vm4, %v664_v11  ;;  %v927_v20 = vrot.slane %v664_v11, 4 }
 0x3bf   :  { %3306 = vmatpush3.bf16.msra.mxu0 %v982_v19  ;;  %3307 = vmatprep.mubr.msk.bf16.mxu0 %vm3717_vm1, %v3716_v14 }
 0x3c0   :  { %3302 = vmatmul.mubr.msk.bf16.vlgmr.msra.gmra.mrb[32].mxu1 %vm573_vm4, %v927_v20  ;;  %3317 = vmatprep.subr.bf16.mxu0 %v3716_v14  ;;  %v665_v22 = vpack.c.bf16 %v661_v16, %v660_v18 }
 0x3c1   :  { %3312 = vmatpush3.bf16.msra.mxu1 %v1032_v21  ;;  %3313 = vmatprep.mubr.msk.bf16.mxu1 %vm3717_vm1, %v3716_v14 }
 0x3c2   :  { %3329 = vmatprep.subr.bf16.mxu1 %v3716_v14  ;;  %v1025_v23 = vrot.slane %v665_v22, 4 }
 0x3c6   :  { %3308 = vmatmul.mubr.msk.bf16.vlgmr.msra.gmra.mrb[24].mxu0 %vm573_vm4, %v665_v22 }
 0x3c7   :  { %3325 = vmatprep.mubr.msk.bf16.mxu0 %vm3717_vm1, %v3716_v14  ;;  %3318 = vmatpush3.bf16.msra.mxu0 %v3556_v24 }
 0x3c8   :  { %3314 = vmatmul.mubr.msk.bf16.vlgmr.msra.gmra.mrb[36].mxu1 %vm573_vm4, %v1025_v23  ;;  %3319 = vmatprep.subr.bf16.mxu0 %v3716_v14  ;;  %v2993_v23 = vld [vmem:[%s4479_s6] ss:$0 sm:$0xff] }
 0x3c9   :  { %3337 = vmatprep.mubr.msk.bf16.mxu1 %vm3717_vm1, %v3716_v14 }
 0x3cb   :  { %3320 = vmatpush3.bf16.msra.mxu0 %v3557_v41 }
 0x3cc   :  { %3321 = vmatprep.subr.bf16.mxu0 %v3716_v14 }
 0x3cf   :  { %3322 = vmatpush3.bf16.msra.mxu0 %v3558_v42 }
 0x3d0   :  { %3323 = vmatprep.subr.bf16.mxu0 %v3716_v14 }
 0x3d3   :  { %3324 = vmatpush3.bf16.msra.mxu0 %v3559_v45  ;;  %v3563_v45 = vld [vmem:[%s4480_s7 + $0x18] sm:$0xff]  }
 0x3d4   :  { %3341 = vmatprep.subr.bf16.mxu0 %v3716_v14 }
 0x454   :  { %v707_v25 = vpop.f32.mrb[12].mxu0 }
 0x455   :  { %v3273_v26 = vpop.f32.mrb[13].mxu0 }
 0x456   :  { %v710_v27 = vpop.f32.mrb[14].mxu0  ;;  %v758_v28 = vpop.f32.mrb[24].mxu1 }
 0x457   :  { %v3274_v30 = vpop.f32.mrb[15].mxu0  ;;  %v3279_v31 = vpop.f32.mrb[25].mxu1 }
 0x458   :  { %v761_v32 = vpop.f32.mrb[26].mxu1 }
 0x459   :  { %v3280_v34 = vpop.f32.mrb[27].mxu1 }
 0x45c   :  { %v806_v29 = vpop.f32.mrb[16].mxu0 }
 0x45d   :  { %v3285_v33 = vpop.f32.mrb[17].mxu0 }
 0x45e   :  { %v809_v35 = vpop.f32.mrb[18].mxu0  ;;  %v856_v36 = vpop.f32.mrb[28].mxu1 }
 0x45f   :  { %v3286_v37 = vpop.f32.mrb[19].mxu0  ;;  %v3291_v38 = vpop.f32.mrb[29].mxu1 }
 0x460   :  { %v859_v39 = vpop.f32.mrb[30].mxu1 }
 0x461   :  { %v3292_v40 = vpop.f32.mrb[31].mxu1 }
 0x491   :  { %v920_v43 = vpop.f32.mrb[20].mxu0 }
 0x492   :  { %v3297_v44 = vpop.f32.mrb[21].mxu0 }
 0x493   :  { %v923_v46 = vpop.f32.mrb[22].mxu0  ;;  %v970_v47 = vpop.f32.mrb[32].mxu1  ;;  %v3562_v44 = vld [vmem:[%s4480_s7 + $0x10] sm:$0xff]  }
 0x494   :  { %v3512_v48 = vpack.i.bf16 %v970_v47, %v758_v28  ;;  %v3298_v49 = vpop.f32.mrb[23].mxu0  ;;  %v3303_v50 = vpop.f32.mrb[33].mxu1 }
 0x495   :  { %v973_v51 = vpop.f32.mrb[34].mxu1 }
 0x496   :  { %3513 = vrot.lane.b32.xlu0 %v3512_v48, %s3723_s29  ;;  %v3304_v52 = vpop.f32.mrb[35].mxu1 }
 0x499   :  { %v1018_v53 = vpop.f32.mrb[24].mxu0 }
 0x49a   :  { %v3517_v54 = vpack.i.bf16 %v1018_v53, %v806_v29  ;;  %v3309_v55 = vpop.f32.mrb[25].mxu0  ;;  %v3000_v53 = vld [vmem:[%s4484_s11] ss:$0 sm:$0xff] }
 0x49b   :  { %v1021_v56 = vpop.f32.mrb[26].mxu0  ;;  %v1068_v58 = vpop.f32.mrb[36].mxu1 }
 0x49c   :  { %v3522_v60 = vpack.i.bf16 %v1068_v58, %v856_v36  ;;  %3518 = vrot.lane.b32.xlu1 %v3517_v54, %s3720_s26  ;;  %v3310_v61 = vpop.f32.mrb[27].mxu0  ;;  %v3315_v62 = vpop.f32.mrb[37].mxu1 }
 0x49d   :  { %v1071_v63 = vpop.f32.mrb[38].mxu1 }
 0x49e   :  { %3523 = vrot.lane.b32.xlu0 %v3522_v60, %s3721_s27  ;;  %v3316_v0 = vpop.f32.mrb[39].mxu1  ;;  %v3001_v60 = vld [vmem:[%s4484_s11 + $0x1] ss:$0 sm:$0xff] }
 0x508   :  { %v3514_v3 = vpop.permute.xlu0 %3513 }
 0x509   :  { %v3516_v4 = vunpack.i.h.bf16 %v3514_v3  ;;  %v3515_v59 = vunpack.i.l.bf16 %v3514_v3  ;;  %v3564_v3 = vld [vmem:[%s4482_s9] sm:$0xff]  }
 0x50b   :  { %v1086_v7 = vsel %vm169_vm2, %v920_v43, %v3516_v4  ;;  %v874_v11 = vsel %vm169_vm2, %v707_v25, %v3515_v59  ;;  %v3561_v43 = vld [vmem:[%s4480_s7 + $0x8] sm:$0xff]   ;;  %v3566_v59 = vld [vmem:[%s4482_s9 + $0x10] sm:$0xff]  }
 0x50c   :  { %v3565_v4 = vld [vmem:[%s4482_s9 + $0x8] sm:$0xff]  }
 0x50e   :  { %v3519_v5 = vpop.permute.xlu1 %3518 }
 0x50f   :  { %v3521_v1 = vunpack.i.h.bf16 %v3519_v5  ;;  %v3520_v6 = vunpack.i.l.bf16 %v3519_v5  ;;  %v3568_v5 = vld [vmem:[%s4482_s9 + $0x20] sm:$0xff]  }
 0x510   :  { %v3524_v12 = vpop.permute.xlu0 %3523 }
 0x511   :  { %v1087_v13 = vsel %vm875_vm5, %v1086_v7, %v3521_v1  ;;  %v876_v16 = vsel %vm875_vm5, %v874_v11, %v3520_v6  ;;  %v3526_v19 = vunpack.i.h.bf16 %v3524_v12  ;;  %v3525_v20 = vunpack.i.l.bf16 %v3524_v12  ;;  %v3569_v1 = vld [vmem:[%s4482_s9 + $0x28] sm:$0xff]   ;;  %v3570_v6 = vld [vmem:[%s4482_s9 + $0x30] sm:$0xff]   ;;  %v3571_v7 = vld [vmem:[%s4482_s9 + $0x38] sm:$0xff]  }
 0x512   :  { %v3002_v11 = vld [vmem:[%s4481_s8] ss:$0 sm:$0xff] }
 0x513   :  { %v878_v18 = vsel %vm877_vm6, %v876_v16, %v3525_v20  ;;  %v1088_v21 = vsel %vm877_vm6, %v1087_v13, %v3526_v19 }
 0x514   :  { %v1089_v22 = vpack.c.bf16 %v1088_v21, %v878_v18 }
 0x516   :  { %3326 = vmatmul.mubr.msk.bf16.vlgmr.msra.gmra.mrb[28].mxu0 %vm117_vm0, %v1089_v22 }
 0x517   :  { %3357 = vmatprep.mubr.msk.bf16.mxu0 %vm3717_vm1, %v3716_v14  ;;  %3342 = vmatpush3.bf16.msra.mxu0 %v3564_v3  ;;  %v3580_v3 = vld [vmem:[%s4476_s3 + $0x64] ss:$8 sps:$4 sm:$0xff]  }
 0x518   :  { %3343 = vmatprep.subr.bf16.mxu0 %v3716_v14 }
 0x51b   :  { %3344 = vmatpush3.bf16.msra.mxu0 %v3565_v4  ;;  %v3578_v4 = vld [vmem:[%s4476_s3 + $0x60] ss:$8 sps:$4 sm:$0xff]  }
 0x51c   :  { %3345 = vmatprep.subr.bf16.mxu0 %v3716_v14 }
 0x51f   :  { %3346 = vmatpush3.bf16.msra.mxu0 %v3566_v59  ;;  %v3581_v59 = vld [vmem:[%s4476_s3 + $0x70] ss:$8 sps:$4 sm:$0xff]  }
 0x520   :  { %3347 = vmatprep.subr.bf16.mxu0 %v3716_v14 }
 0x5e9   :  { %v1166_v24 = vpop.f32.mrb[28].mxu0 }
 0x5ea   :  { %v1167_v25 = vadd.f32 %v2993_v23, %v1166_v24  ;;  %v3327_v26 = vpop.f32.mrb[29].mxu0 }
 0x5eb   :  { %v1169_v27 = vpop.f32.mrb[30].mxu0 }
 0x5ec   :  { %v1170_v28 = vadd.f32 %v2993_v23, %v1169_v27  ;;  %v3328_v30 = vpop.f32.mrb[31].mxu0  ;;  %v1173_v31 = vadd.f32 %v1167_v25, %v3821_v9 }
 0x5ee   :  { %v1178_v32 = vsel %vm117_vm0, %v1173_v31, 0.0  ;;  %v1174_v34 = vadd.f32 %v1170_v28, %v3826_v10  ;;  %v3560_v10 = vld [vmem:[%s4480_s7] sm:$0xff]  }
 0x5ef   :  { %1179 = vadd.xlane.f32.xlu1 %v1178_v32  ;;  %3330 = vmatpush3.bf16.msra.mxu1 %v3560_v10 }
 0x5f0   :  { %v1181_v29 = vsel %vm117_vm0, %v1174_v34, 0.0  ;;  %3331 = vmatprep.subr.bf16.mxu1 %v3716_v14 }
 0x5f1   :  { %1182 = vadd.xlane.f32.xlu0 %v1181_v29 }
 0x5f3   :  { %3332 = vmatpush3.bf16.msra.mxu1 %v3561_v43 }
 0x5f4   :  { %3333 = vmatprep.subr.bf16.mxu1 %v3716_v14 }
 0x5f7   :  { %3334 = vmatpush3.bf16.msra.mxu1 %v3562_v44 }
 0x5f8   :  { %3335 = vmatprep.subr.bf16.mxu1 %v3716_v14 }
 0x5fb   :  { %3336 = vmatpush3.bf16.msra.mxu1 %v3563_v45 }
 0x67c   :  { %v1180_v33 = vpop.xlane.xlu1 %1179 }
 0x67d   :  { %v1185_v35 = vmul.f32 0.015625, %v1180_v33 }
 0x67e   :  { %v1183_v36 = vpop.xlane.xlu0 %1182 }
 0x67f   :  { %v1187_v37 = vsub.f32 %v1173_v31, %v1185_v35  ;;  %v1186_v38 = vmul.f32 0.015625, %v1183_v36 }
 0x681   :  { %v1188_v39 = vsub.f32 %v1174_v34, %v1186_v38  ;;  %v1189_v40 = vmul.f32 %v1187_v37, %v1187_v37 }
 0x683   :  { %v1191_v41 = vsel %vm117_vm0, %v1189_v40, 0.0  ;;  %v1190_v42 = vmul.f32 %v1188_v39, %v1188_v39  ;;  %v3008_v40 = vld [vmem:[%s4483_s10] ss:$0 sm:$0xff] }
 0x684   :  { %1192 = vadd.xlane.f32.xlu0 %v1191_v41 }
 0x685   :  { %v1194_v9 = vsel %vm117_vm0, %v1190_v42, 0.0 }
 0x686   :  { %1195 = vadd.xlane.f32.xlu1 %v1194_v9 }
 0x711   :  { %v1193_v46 = vpop.xlane.xlu0 %1192 }
 0x712   :  { %v1197_v47 = vmul.f32 0.015625, %v1193_v46 }
 0x713   :  { %v1196_v48 = vpop.xlane.xlu1 %1195 }
 0x714   :  { %v1199_v49 = vadd.f32 1e-07, %v1197_v47  ;;  %v1198_v50 = vmul.f32 0.015625, %v1196_v48 }
 0x716   :  { %3632 = vrsqrt.f32 %v1199_v49  ;;  %v1200_v51 = vadd.f32 1e-07, %v1198_v50 }
 0x718   :  { %3634 = vrsqrt.f32 %v1200_v51 }
 0x720   :  { %v3633_v52 = vpop.eup %3632 }
 0x721   :  { %v1203_v54 = vmul.f32 %v3633_v52, %v1187_v37 }
 0x722   :  { %v3635_v55 = vpop.eup %3634 }
 0x723   :  { %v1211_v56 = vmul.f32 %v3000_v53, %v1203_v54  ;;  %v1204_v58 = vmul.f32 %v3635_v55, %v1188_v39 }
 0x725   :  { %v1212_v61 = vmul.f32 %v3000_v53, %v1204_v58  ;;  %v4076_v62 = vadd.f32 %v3001_v60, %v1211_v56 }
 0x727   :  { %v4078_v63 = vadd.f32 %v3001_v60, %v1212_v61  ;;  %v3574_v61 = vld [vmem:[%s4476_s3 + $0x44] ss:$8 sps:$4 sm:$0xff]  }
 0x728   :  { %1550 = vmatprep.subr.bf16.mxu1 %v3574_v61 }
 0x729   :  { %v1221_v0 = vpack.c.bf16 %v4078_v63, %v4076_v62 }
 0x72b   :  { %3338 = vmatmul.mubr.msk.bf16.vlgmr.msra.gmra.mrb[40].mxu1 %vm117_vm0, %v1221_v0  ;;  %v3575_v0 = vld [vmem:[%s4476_s3 + $0x50] ss:$8 sps:$4 sm:$0xff]  }
 0x72c   :  { %1582 = vmatprep.mubr.bf16.mxu1 %v3715_v2  ;;  %v3567_v2 = vld [vmem:[%s4482_s9 + $0x18] sm:$0xff]  }
 0x72d   :  { %3348 = vmatpush3.bf16.msra.mxu0 %v3567_v2  ;;  %v3583_v2 = vld [vmem:[%s4476_s3 + $0x74] ss:$8 sps:$4 sm:$0xff]  }
 0x72e   :  { %3349 = vmatprep.subr.bf16.mxu0 %v3716_v14 }
 0x731   :  { %3350 = vmatpush3.bf16.msra.mxu0 %v3568_v5 }
 0x732   :  { %3351 = vmatprep.subr.bf16.mxu0 %v3716_v14 }
 0x735   :  { %3352 = vmatpush3.bf16.msra.mxu0 %v3569_v1 }
 0x736   :  { %3353 = vmatprep.subr.bf16.mxu0 %v3716_v14 }
 0x739   :  { %3354 = vmatpush3.bf16.msra.mxu0 %v3570_v6 }
 0x73a   :  { %3355 = vmatprep.subr.bf16.mxu0 %v3716_v14 }
 0x73d   :  { %3356 = vmatpush3.bf16.msra.mxu0 %v3571_v7 }
 0x73e   :  { %3373 = vmatprep.subr.bf16.mxu0 %v3716_v14 }
 0x7fe   :  { %v1298_v12 = vpop.f32.mrb[40].mxu1 }
 0x7ff   :  { %v1299_v13 = vadd.f32 %v3002_v11, %v1298_v12  ;;  %v3339_v16 = vpop.f32.mrb[41].mxu1 }
 0x800   :  { %v1301_v19 = vpop.f32.mrb[42].mxu1  ;;  %v3019_v16 = vld [vmem:[%s4484_s11 + $0x2] ss:$0 sm:$0xff] }
 0x801   :  { %v1305_v20 = vmul.f32 %v1299_v13, %v1299_v13  ;;  %v1302_v18 = vadd.f32 %v3002_v11, %v1301_v19  ;;  %v3340_v21 = vpop.f32.mrb[43].mxu1 }
 0x803   :  { %v1307_v22 = vmul.f32 %v1305_v20, %v1299_v13  ;;  %v1306_v23 = vmul.f32 %v1302_v18, %v1302_v18 }
 0x805   :  { %v1309_v24 = vmul.f32 0.044715, %v1307_v22  ;;  %v1308_v25 = vmul.f32 %v1306_v23, %v1302_v18  ;;  %v3020_v22 = vld [vmem:[%s4484_s11 + $0x3] ss:$0 sm:$0xff] }
 0x807   :  { %v1311_v26 = vadd.f32 %v1309_v24, %v1299_v13  ;;  %v1310_v27 = vmul.f32 0.044715, %v1308_v25 }
 0x809   :  { %v1313_v28 = vmul.f32 0.7978846, %v1311_v26  ;;  %v1312_v30 = vadd.f32 %v1310_v27, %v1302_v18  ;;  %v3029_v27 = vld [vmem:[%s4477_s4 + $0x2] sm:$0x3] }
 0x80b   :  { %3636 = vtanh.f32 %v1313_v28  ;;  %v1314_v31 = vmul.f32 0.7978846, %v1312_v30  ;;  %v1500_v28 = vrot.slane %v3029_v27, %v3833_v15 }
 0x80d   :  { %3638 = vtanh.f32 %v1314_v31  ;;  %v1504_v31 = vrot.slane %v3029_v27, %v3838_v17 }
 0x815   :  { %v3637_v32 = vpop.eup %3636 }
 0x816   :  { %v1317_v34 = vadd.f32 1.0, %v3637_v32 }
 0x817   :  { %v3639_v29 = vpop.eup %3638 }
 0x818   :  { %v1319_v33 = vmul.f32 0.5, %v1317_v34  ;;  %v1318_v35 = vadd.f32 1.0, %v3639_v29 }
 0x81a   :  { %v1320_v36 = vmul.f32 0.5, %v1318_v35  ;;  %v1321_v37 = vmul.f32 %v1319_v33, %v1299_v13 }
 0x81c   :  { %v1322_v38 = vmul.f32 %v1320_v36, %v1302_v18 }
 0x81e   :  { %v1323_v39 = vpack.c.bf16 %v1322_v38, %v1321_v37 }
 0x820   :  { %3358 = vmatmul.mubr.bf16.vlgmr.msra.gmra.mrb[32].mxu0 %v1323_v39 }
 0x821   :  { %3375 = vmatprep.mubr.msk.bf16.mxu0 %vm3717_vm1, %v3716_v14 }
 0x8f3   :  { %v1429_v41 = vpop.f32.mrb[32].mxu0 }
 0x8f4   :  { %v1430_v42 = vadd.f32 %v3008_v40, %v1429_v41  ;;  %v3359_v9 = vpop.f32.mrb[33].mxu0 }
 0x8f5   :  { %v1432_v10 = vpop.f32.mrb[34].mxu0 }
 0x8f6   :  { %v1433_v43 = vadd.f32 %v3008_v40, %v1432_v10  ;;  %v3360_v44 = vpop.f32.mrb[35].mxu0  ;;  %v1436_v45 = vadd.f32 %v1430_v42, %v4076_v62  ;;  %v3572_v62 = vld [vmem:[%s4476_s3 + $0x40] ss:$8 sps:$4 sm:$0xff]  }
 0x8f7   :  { %1551 = vmatpush1.bf16.msra.mxu1 %v3572_v62 }
 0x8f8   :  { %v1442_v46 = vsel %vm117_vm0, %v1436_v45, 0.0  ;;  %v1437_v47 = vadd.f32 %v1433_v43, %v4078_v63  ;;  %v3577_v63 = vld [vmem:[%s4476_s3 + $0x54] ss:$8 sps:$4 sm:$0xff]  }
 0x8f9   :  { %1443 = vadd.xlane.f32.xlu0 %v1442_v46  ;;  %1552 = vmatprep.subr.bf16.mxu1 %v3577_v63 }
 0x8fa   :  { %v1445_v48 = vsel %vm117_vm0, %v1437_v47, 0.0 }
 0x8fb   :  { %1446 = vadd.xlane.f32.xlu1 %v1445_v48  ;;  %1553 = vmatpush1.bf16.msra.mxu1 %v3575_v0 }
 0x8fc   :  { %1554 = vmatprep.subr.bf16.mxu1 %v3580_v3 }
 0x8ff   :  { %1555 = vmatpush1.bf16.msra.mxu1 %v3578_v4 }
 0x900   :  { %1556 = vmatprep.subr.bf16.mxu1 %v3583_v2 }
 0x903   :  { %1557 = vmatpush1.bf16.msra.mxu1 %v3581_v59 }
 0x904   :  { %3361 = vmatprep.subr.bf16.mxu1 %v3716_v14 }
 0x986   :  { %v1444_v49 = vpop.xlane.xlu0 %1443 }
 0x987   :  { %v1448_v50 = vmul.f32 0.015625, %v1444_v49 }
 0x988   :  { %v1447_v51 = vpop.xlane.xlu1 %1446 }
 0x989   :  { %v1450_v52 = vsub.f32 %v1436_v45, %v1448_v50  ;;  %v1449_v53 = vmul.f32 0.015625, %v1447_v51 }
 0x98b   :  { %v1451_v54 = vsub.f32 %v1437_v47, %v1449_v53  ;;  %v1452_v55 = vmul.f32 %v1450_v52, %v1450_v52 }
 0x98d   :  { %v1454_v56 = vsel %vm117_vm0, %v1452_v55, 0.0  ;;  %v1453_v58 = vmul.f32 %v1451_v54, %v1451_v54 }
 0x98e   :  { %1455 = vadd.xlane.f32.xlu0 %v1454_v56 }
 0x98f   :  { %v1457_v60 = vsel %vm117_vm0, %v1453_v58, 0.0 }
 0x990   :  { %1458 = vadd.xlane.f32.xlu1 %v1457_v60 }
 0xa1b   :  { %v1456_v5 = vpop.xlane.xlu0 %1455 }
 0xa1c   :  { %v1460_v1 = vmul.f32 0.015625, %v1456_v5 }
 0xa1d   :  { %v1459_v6 = vpop.xlane.xlu1 %1458 }
 0xa1e   :  { %v1462_v7 = vadd.f32 1e-07, %v1460_v1  ;;  %v1461_v11 = vmul.f32 0.015625, %v1459_v6 }
 0xa20   :  { %3640 = vrsqrt.f32 %v1462_v7  ;;  %v1463_v12 = vadd.f32 1e-07, %v1461_v11 }
 0xa22   :  { %3642 = vrsqrt.f32 %v1463_v12 }
 0xa2a   :  { %v3641_v13 = vpop.eup %3640 }
 0xa2b   :  { %v1466_v19 = vmul.f32 %v3641_v13, %v1450_v52 }
 0xa2c   :  { %v3643_v20 = vpop.eup %3642 }
 0xa2d   :  { %v1474_v18 = vmul.f32 %v3019_v16, %v1466_v19  ;;  %v1467_v21 = vmul.f32 %v3643_v20, %v1451_v54 }
 0xa2f   :  { %v1475_v23 = vmul.f32 %v3019_v16, %v1467_v21  ;;  %v4161_v24 = vadd.f32 %v3020_v22, %v1474_v18 }
 0xa31   :  { %v4163_v25 = vadd.f32 %v3020_v22, %v1475_v23 }
 0xa33   :  { %v1484_v26 = vpack.c.bf16 %v4163_v25, %v4161_v24 }
 0xa35   :  { %3038 = vmatmul.mubr.msk.bf16.vlgmr.msra.gmra.mrb[44].mxu1 %vm117_vm0, %v1484_v26 }
 0xa36   :  { %3363 = vmatprep.mubr.msk.bf16.mxu1 %vm3717_vm1, %v3716_v14 }
 0xb08   :  { %v1584_v30 = vpop.f32.mrb[44].mxu1 }
 0xb09   :  { %v1586_v32 = vpop.f32.mrb[45].mxu1  ;;  %v1585_v29 = vadd.f32 %v1584_v30, %v1500_v28 }
 0xb0a   :  { %v1588_v34 = vpop.f32.mrb[46].mxu1  ;;  %v1587_v36 = vadd.f32 %v1586_v32, %v1504_v31 }
 0xb0b   :  { %v1589_v33 = vadd.f32 %v1588_v34, %v1500_v28  ;;  %v1590_v35 = vpop.f32.mrb[47].mxu1 }
 0xb0c   :  { %v1591_v37 = vadd.f32 %v1590_v35, %v1504_v31 }
 0xb0d   :  { %v1593_v38 = vpack.c.bf16 %v1589_v33, %v1585_v29 }
 0xb0e   :  { %v4175_v39 = vpack.c.bf16 %v1591_v37, %v1587_v36 }
 0xb0f   :  { %1646 = vrot.lane.b32.xlu1 %v1593_v38, %s3721_s27  ;;  %1596 = vrot.lane.b32.xlu0 %v1593_v38, %s3719_s25  ;;  %v1794_v15 = vrot.slane %v1593_v38, 4 }
 0xb10   :  { %v2097_v56 = vsel %vm669_vm3, %v4175_v39, 0 }
 0xb13   :  { %1644 = vrot.lane.b32.xlu1 %v1593_v38, %s3718_s24  ;;  %1696 = vrot.lane.b32.xlu0 %v1593_v38, %s3720_s26 }
 0xb17   :  { %1746 = vrot.lane.b32.xlu1 %v1593_v38, %s3723_s29  ;;  %1694 = vrot.lane.b32.xlu0 %v1593_v38, %s3722_s28 }
 0xb1b   :  { %1744 = vrot.lane.b32.xlu1 %v1593_v38, %s3724_s30  ;;  %1795 = vrot.lane.b32.xlu0 %v1794_v15, %s3719_s25 }
 0xb1f   :  { %1845 = vrot.lane.b32.xlu1 %v1794_v15, %s3721_s27  ;;  %1843 = vrot.lane.b32.xlu0 %v1794_v15, %s3718_s24 }
 0xb23   :  { %1895 = vrot.lane.b32.xlu1 %v1794_v15, %s3720_s26  ;;  %1945 = vrot.lane.b32.xlu0 %v1794_v15, %s3723_s29 }
 0xb27   :  { %1893 = vrot.lane.b32.xlu1 %v1794_v15, %s3722_s28  ;;  %1943 = vrot.lane.b32.xlu0 %v1794_v15, %s3724_s30 }
 0xb81   :  { %v1647_v17 = vpop.permute.xlu1 %1646  ;;  %v1597_v40 = vpop.permute.xlu0 %1596 }
 0xb82   :  { %v1602_v41 = vsel %vm169_vm2, %v1597_v40, 0  ;;  %v1652_v45 = vsel %vm169_vm2, %v1647_v17, 0 }
 0xb83   :  { %3362 = vmatpush3.bf16.xpose.msra.mxu1 %v1602_v41 }
 0xb84   :  { %3367 = vmatprep.subr.bf16.mxu1 %v3716_v14 }
 0xb85   :  { %v1645_v42 = vpop.permute.xlu1 %1644  ;;  %v1697_v9 = vpop.permute.xlu0 %1696 }
 0xb86   :  { %v1702_v10 = vsel %vm169_vm2, %v1697_v9, 0 }
 0xb87   :  { %3374 = vmatpush3.bf16.xpose.msra.mxu0 %v1702_v10 }
 0xb88   :  { %3385 = vmatprep.subr.bf16.mxu0 %v3716_v14 }
 0xb89   :  { %v1747_v43 = vpop.permute.xlu1 %1746  ;;  %v1695_v44 = vpop.permute.xlu0 %1694 }
 0xb8a   :  { %3364 = vmatmul.mubr.msk.bf16.vlgmr.msra.gmra.mrb[48].mxu1 %vm169_vm2, %v1593_v38  ;;  %v1752_v50 = vsel %vm169_vm2, %v1747_v43, 0 }
 0xb8b   :  { %3368 = vmatpush3.bf16.xpose.msra.mxu1 %v1652_v45  ;;  %3369 = vmatprep.mubr.msk.bf16.mxu1 %vm3717_vm1, %v3716_v14 }
 0xb8c   :  { %3379 = vmatprep.subr.bf16.mxu1 %v3716_v14 }
 0xb8d   :  { %v1745_v46 = vpop.permute.xlu1 %1744  ;;  %v1796_v47 = vpop.permute.xlu0 %1795 }
 0xb8e   :  { %v1801_v48 = vsel %vm169_vm2, %v1796_v47, 0  ;;  %3376 = vmatmul.mubr.msk.bf16.vlgmr.msra.gmra.mrb[36].mxu0 %vm169_vm2, %v1695_v44 }
 0xb8f   :  { %3386 = vmatpush3.bf16.xpose.msra.mxu0 %v1801_v48  ;;  %3387 = vmatprep.mubr.msk.bf16.mxu0 %vm3717_vm1, %v3716_v14 }
 0xb90   :  { %3397 = vmatprep.subr.bf16.mxu0 %v3716_v14 }
 0xb91   :  { %v1846_v49 = vpop.permute.xlu1 %1845  ;;  %v1844_v53 = vpop.permute.xlu0 %1843 }
 0xb92   :  { %3370 = vmatmul.mubr.msk.bf16.vlgmr.msra.gmra.mrb[52].mxu1 %vm169_vm2, %v1645_v42  ;;  %v1851_v54 = vsel %vm169_vm2, %v1846_v49, 0 }
 0xb93   :  { %3380 = vmatpush3.bf16.xpose.msra.mxu1 %v1752_v50  ;;  %3381 = vmatprep.mubr.msk.bf16.mxu1 %vm3717_vm1, %v3716_v14 }
 0xb94   :  { %3391 = vmatprep.subr.bf16.mxu1 %v3716_v14 }
 0xb95   :  { %v1896_v51 = vpop.permute.xlu1 %1895  ;;  %v1946_v58 = vpop.permute.xlu0 %1945 }
 0xb96   :  { %v1901_v52 = vsel %vm169_vm2, %v1896_v51, 0  ;;  %3388 = vmatmul.mubr.msk.bf16.vlgmr.msra.gmra.mrb[40].mxu0 %vm169_vm2, %v1794_v15  ;;  %v1951_v60 = vsel %vm169_vm2, %v1946_v58, 0 }
 0xb97   :  { %3398 = vmatpush3.bf16.xpose.msra.mxu0 %v1901_v52  ;;  %3399 = vmatprep.mubr.msk.bf16.mxu0 %vm3717_vm1, %v3716_v14 }
 0xb98   :  { %3409 = vmatprep.subr.bf16.mxu0 %v3716_v14 }
 0xb99   :  { %v1894_v55 = vpop.permute.xlu1 %1893  ;;  %v1944_v61 = vpop.permute.xlu0 %1943 }
 0xb9a   :  { %3382 = vmatmul.mubr.msk.bf16.vlgmr.msra.gmra.mrb[56].mxu1 %vm169_vm2, %v1745_v46 }
 0xb9b   :  { %3392 = vmatpush3.bf16.xpose.msra.mxu1 %v1851_v54  ;;  %3393 = vmatprep.mubr.msk.bf16.mxu1 %vm3717_vm1, %v3716_v14 }
 0xb9c   :  { %3403 = vmatprep.subr.bf16.mxu1 %v3716_v14 }
 0xb9e   :  { %3400 = vmatmul.mubr.msk.bf16.vlgmr.msra.gmra.mrb[44].mxu0 %vm169_vm2, %v1894_v55 }
 0xb9f   :  { %3410 = vmatpush3.bf16.msra.mxu0 %v2097_v56  ;;  %3411 = vmatprep.mubr.msk.bf16.mxu0 %vm3717_vm1, %v3716_v14 }
 0xba0   :  { %3421 = vmatprep.subr.bf16.mxu0 %v3716_v14 }
 0xba2   :  { %3394 = vmatmul.mubr.msk.bf16.vlgmr.msra.gmra.mrb[60].mxu1 %vm169_vm2, %v1844_v53 }
 0xba3   :  { %3404 = vmatpush3.bf16.xpose.msra.mxu1 %v1951_v60  ;;  %3405 = vmatprep.mubr.msk.bf16.mxu1 %vm3717_vm1, %v3716_v14 }
 0xba4   :  { %3415 = vmatprep.subr.bf16.mxu1 %v3716_v14 }
 0xbaa   :  { %3406 = vmatmul.mubr.msk.bf16.vlgmr.msra.gmra.mrb[64].mxu1 %vm169_vm2, %v1944_v61 }
 0xbab   :  { %3417 = vmatprep.mubr.msk.bf16.mxu1 %vm3717_vm1, %v3716_v14 }
 0xc5d   :  { %v1638_v62 = vpop.f32.mrb[48].mxu1 }
 0xc5e   :  { %v1993_v63 = vadd.f32 %v1638_v62, %v3909_v57  ;;  %v3365_v0 = vpop.f32.mrb[49].mxu1 }
 0xc5f   :  { %v1641_v3 = vpop.f32.mrb[50].mxu1 }
 0xc60   :  { %v3366_v4 = vpop.f32.mrb[51].mxu1  ;;  %v2001_v59 = vsel %vm573_vm4, %v1993_v63, -inf }
 0xc61   :  { %2002 = vmax.xlane.f32.xlu1 %v2001_v59  ;;  %v1738_v2 = vpop.f32.mrb[36].mxu0 }
 0xc62   :  { %v1995_v5 = vadd.f32 %v1738_v2, %v3909_v57  ;;  %v3377_v1 = vpop.f32.mrb[37].mxu0 }
 0xc63   :  { %v1741_v6 = vpop.f32.mrb[38].mxu0 }
 0xc64   :  { %v3378_v7 = vpop.f32.mrb[39].mxu0  ;;  %v2007_v11 = vsel %vm573_vm4, %v1995_v5, -inf }
 0xc65   :  { %v1688_v12 = vpop.f32.mrb[52].mxu1  ;;  %2008 = vmax.xlane.f32.xlu0 %v2007_v11 }
 0xc66   :  { %v1994_v13 = vadd.f32 %v1688_v12, %v3909_v57  ;;  %v3371_v16 = vpop.f32.mrb[53].mxu1 }
 0xc67   :  { %v1691_v19 = vpop.f32.mrb[54].mxu1 }
 0xc68   :  { %v3372_v20 = vpop.f32.mrb[55].mxu1  ;;  %v2004_v18 = vsel %vm573_vm4, %v1994_v13, -inf }
 0xc69   :  { %2005 = vmax.xlane.f32.xlu0 %v2004_v18  ;;  %v1837_v21 = vpop.f32.mrb[40].mxu0 }
 0xc6a   :  { %v4241_v22 = vadd.f32 %v1837_v21, %v3916_v8  ;;  %v3389_v23 = vpop.f32.mrb[41].mxu0 }
 0xc6b   :  { %v1840_v26 = vpop.f32.mrb[42].mxu0 }
 0xc6c   :  { %v3390_v27 = vpop.f32.mrb[43].mxu0  ;;  %v2013_v28 = vsel %vm573_vm4, %v4241_v22, -inf }
 0xc6d   :  { %v1788_v30 = vpop.f32.mrb[56].mxu1  ;;  %2014 = vmax.xlane.f32.xlu0 %v2013_v28 }
 0xc6e   :  { %v4246_v31 = vadd.f32 %v1788_v30, %v3909_v57  ;;  %v3383_v32 = vpop.f32.mrb[57].mxu1 }
 0xc6f   :  { %v1791_v34 = vpop.f32.mrb[58].mxu1 }
 0xc70   :  { %v3384_v29 = vpop.f32.mrb[59].mxu1  ;;  %v2010_v33 = vsel %vm573_vm4, %v4246_v31, -inf }
 0xc71   :  { %2011 = vmax.xlane.f32.xlu1 %v2010_v33  ;;  %v1937_v35 = vpop.f32.mrb[44].mxu0 }
 0xc72   :  { %v1999_v36 = vadd.f32 %v1937_v35, %v3916_v8  ;;  %v3401_v37 = vpop.f32.mrb[45].mxu0 }
 0xc73   :  { %v1940_v38 = vpop.f32.mrb[46].mxu0 }
 0xc74   :  { %v3402_v15 = vpop.f32.mrb[47].mxu0  ;;  %v2019_v17 = vsel %vm573_vm4, %v1999_v36, -inf }
 0xc75   :  { %v1887_v40 = vpop.f32.mrb[60].mxu1  ;;  %2020 = vmax.xlane.f32.xlu0 %v2019_v17 }
 0xc76   :  { %v1998_v57 = vadd.f32 %v1887_v40, %v3916_v8  ;;  %v3395_v41 = vpop.f32.mrb[61].mxu1 }
 0xc77   :  { %v1890_v42 = vpop.f32.mrb[62].mxu1 }
 0xc78   :  { %v3396_v9 = vpop.f32.mrb[63].mxu1  ;;  %v2016_v10 = vsel %vm573_vm4, %v1998_v57, -inf }
 0xc79   :  { %2017 = vmax.xlane.f32.xlu1 %v2016_v10 }
 0xc7d   :  { %v1987_v43 = vpop.f32.mrb[64].mxu1 }
 0xc7e   :  { %v2000_v44 = vadd.f32 %v1987_v43, %v3916_v8  ;;  %v3407_v45 = vpop.f32.mrb[65].mxu1 }
 0xc7f   :  { %v1990_v46 = vpop.f32.mrb[66].mxu1 }
 0xc80   :  { %v3408_v47 = vpop.f32.mrb[67].mxu1  ;;  %v2022_v48 = vsel %vm573_vm4, %v2000_v44, -inf }
 0xc81   :  { %2023 = vmax.xlane.f32.xlu1 %v2022_v48 }
 0xc8b   :  { %2142 = vrot.lane.b32.xlu0 %v4175_v39, %s3718_s24 }
 0xc92   :  { %2190 = vrot.lane.b32.xlu1 %v4175_v39, %s3722_s28 }
 0xcee   :  { %v2003_v49 = vpop.xlane.xlu1 %2002 }
 0xcef   :  { %v2025_v50 = vsub.f32 %v1993_v63, %v2003_v49 }
 0xcf1   :  { %v2033_v51 = vmul.f32 1.442695, %v2025_v50 }
 0xcf2   :  { %v2009_v52 = vpop.xlane.xlu0 %2008 }
 0xcf3   :  { %3644 = vpow2.f32 %v2033_v51  ;;  %v2027_v53 = vsub.f32 %v1995_v5, %v2009_v52  ;;  %v4269_v5 = vrot.slane %v4175_v39, 4 }
 0xcf5   :  { %v2037_v54 = vmul.f32 1.442695, %v2027_v53 }
 0xcf6   :  { %v2006_v8 = vpop.xlane.xlu0 %2005 }
 0xcf7   :  { %3646 = vpow2.f32 %v2037_v54  ;;  %v2026_v55 = vsub.f32 %v1994_v13, %v2006_v8 }
 0xcf9   :  { %v2035_v56 = vmul.f32 1.442695, %v2026_v55 }
 0xcfa   :  { %v2015_v60 = vpop.xlane.xlu0 %2014 }
 0xcfb   :  { %3648 = vpow2.f32 %v2035_v56  ;;  %v2029_v1 = vsub.f32 %v4241_v22, %v2015_v60 }
 0xcfd   :  { %v3645_v58 = vpop.eup %3644  ;;  %v2041_v11 = vmul.f32 1.442695, %v2029_v1 }
 0xcfe   :  { %v2049_v61 = vsel %vm573_vm4, %v3645_v58, 0.0  ;;  %v2012_v6 = vpop.xlane.xlu1 %2011 }
 0xcff   :  { %2050 = vadd.xlane.f32.xlu0 %v2049_v61  ;;  %v2028_v7 = vsub.f32 %v4246_v31, %v2012_v6  ;;  %3650 = vpow2.f32 %v2041_v11 }
 0xd01   :  { %v4261_v62 = vpop.eup %3646  ;;  %v2039_v16 = vmul.f32 1.442695, %v2028_v7 }
 0xd02   :  { %v2021_v0 = vpop.xlane.xlu0 %2020  ;;  %v2055_v63 = vsel %vm573_vm4, %v4261_v62, 0.0 }
 0xd03   :  { %2056 = vadd.xlane.f32.xlu0 %v2055_v63  ;;  %v2031_v12 = vsub.f32 %v1999_v36, %v2021_v0  ;;  %3652 = vpow2.f32 %v2039_v16 }
 0xd05   :  { %v3649_v3 = vpop.eup %3648  ;;  %v2045_v19 = vmul.f32 1.442695, %v2031_v12 }
 0xd06   :  { %v2143_v4 = vpop.permute.xlu0 %2142  ;;  %v2052_v59 = vsel %vm573_vm4, %v3649_v3, 0.0  ;;  %v2018_v13 = vpop.xlane.xlu1 %2017 }
 0xd07   :  { %v2148_v2 = vsel %vm669_vm3, %v2143_v4, 0  ;;  %2053 = vadd.xlane.f32.xlu1 %v2052_v59  ;;  %v2030_v20 = vsub.f32 %v1998_v57, %v2018_v13  ;;  %3654 = vpow2.f32 %v2045_v19  ;;  %v3584_v13 = vld [vmem:[%s4478_s5 + $0x20] sm:$0xff]  }
 0xd08   :  { %3416 = vmatpush3.bf16.msra.mxu1 %v2148_v2 }
 0xd09   :  { %3427 = vmatprep.subr.bf16.mxu1 %v3716_v14  ;;  %v2043_v21 = vmul.f32 1.442695, %v2030_v20  ;;  %v4277_v26 = vpop.eup %3650 }
 0xd0a   :  { %v2061_v27 = vsel %vm573_vm4, %v4277_v26, 0.0 }
 0xd0b   :  { %3656 = vpow2.f32 %v2043_v21 }
 0xd0d   :  { %v3653_v22 = vpop.eup %3652 }
 0xd0e   :  { %v2024_v18 = vpop.xlane.xlu1 %2023  ;;  %v2058_v30 = vsel %vm573_vm4, %v3653_v22, 0.0 }
 0xd11   :  { %v4281_v28 = vpop.eup %3654 }
 0xd12   :  { %v2067_v31 = vsel %vm573_vm4, %v4281_v28, 0.0  ;;  %v2191_v35 = vpop.permute.xlu1 %2190 }
 0xd13   :  { %v2196_v42 = vsel %vm669_vm3, %v2191_v35, 0  ;;  %v3586_v35 = vld [vmem:[%s4478_s5 + $0x30] sm:$0xff]  }
 0xd15   :  { %v3657_v32 = vpop.eup %3656 }
 0xd16   :  { %v2064_v34 = vsel %vm573_vm4, %v3657_v32, 0.0 }
 0xd18   :  { %2240 = vrot.lane.b32.xlu1 %v4175_v39, %s3724_s30  ;;  %v2032_v39 = vsub.f32 %v2000_v44, %v2024_v18 }
 0xd19   :  { %2352 = vrot.lane.b32.xlu0 %v4269_v5, %s3718_s24 }
 0xd1a   :  { %v2047_v23 = vmul.f32 1.442695, %v2032_v39 }
 0xd1c   :  { %3658 = vpow2.f32 %v2047_v23 }
 0xd26   :  { %v4287_v29 = vpop.eup %3658 }
 0xd27   :  { %v2070_v33 = vsel %vm573_vm4, %v4287_v29, 0.0 }
 0xd38   :  { %2062 = vadd.xlane.f32.xlu0 %v2061_v27 }
 0xd3c   :  { %2059 = vadd.xlane.f32.xlu1 %v2058_v30  ;;  %2068 = vadd.xlane.f32.xlu0 %v2067_v31 }
 0xd40   :  { %2065 = vadd.xlane.f32.xlu1 %v2064_v34 }
 0xd44   :  { %2071 = vadd.xlane.f32.xlu1 %v2070_v33 }
 0xd52   :  { %2450 = vrot.lane.b32.xlu0 %v4269_v5, %s3724_s30 }
 0xd55   :  { %2400 = vrot.lane.b32.xlu1 %v4269_v5, %s3722_s28 }
 0xd8c   :  { %v2051_v36 = vpop.xlane.xlu0 %2050 }
 0xd8d   :  { %3660 = vrcp.f32 %v2051_v36 }
 0xd90   :  { %v2057_v43 = vpop.xlane.xlu0 %2056 }
 0xd94   :  { %v2054_v37 = vpop.xlane.xlu1 %2053  ;;  %v2353_v44 = vpop.permute.xlu0 %2352 }
 0xd95   :  { %3662 = vrcp.f32 %v2054_v37  ;;  %v2358_v61 = vsel %vm669_vm3, %v2353_v44, 0 }
 0xd96   :  { %3664 = vrcp.f32 %v2057_v43 }
 0xd97   :  { %v3661_v38 = vpop.eup %3660 }
 0xd98   :  { %v2081_v17 = vmul.f32 %v3661_v38, %v3645_v58  ;;  %v2241_v41 = vpop.permute.xlu1 %2240  ;;  %v2308_v58 = vsel %vm669_vm3, %v4269_v5, 0  ;;  %v3587_v38 = vld [vmem:[%s4478_s5 + $0x38] sm:$0xff]  }
 0xd99   :  { %v2246_v10 = vsel %vm669_vm3, %v2241_v41, 0 }
 0xd9f   :  { %v3663_v15 = vpop.eup %3662 }
 0xda0   :  { %v2082_v40 = vmul.f32 %v3663_v15, %v3649_v3  ;;  %v3665_v49 = vpop.eup %3664 }
 0xda1   :  { %v2083_v52 = vmul.f32 %v3665_v49, %v4261_v62 }
 0xda2   :  { %v2089_v57 = vpack.c.bf16 %v2082_v40, %v2081_v17 }
 0xda4   :  { %3412 = vmatmul.mubr.msk.bf16.vlgmr.msra.gmra.mrb[48].mxu0 %vm573_vm4, %v2089_v57  ;;  %v2140_v9 = vrot.slane %v2089_v57, 4 }
 0xda5   :  { %3422 = vmatpush3.bf16.msra.mxu0 %v2196_v42  ;;  %3423 = vmatprep.mubr.msk.bf16.mxu0 %vm3717_vm1, %v3716_v14 }
 0xda6   :  { %3418 = vmatmul.mubr.msk.bf16.vlgmr.msra.gmra.mrb[68].mxu1 %vm573_vm4, %v2140_v9  ;;  %3433 = vmatprep.subr.bf16.mxu0 %v3716_v14 }
 0xda7   :  { %3428 = vmatpush3.bf16.msra.mxu1 %v2246_v10  ;;  %3429 = vmatprep.mubr.msk.bf16.mxu1 %vm3717_vm1, %v3716_v14 }
 0xda8   :  { %3439 = vmatprep.subr.bf16.mxu1 %v3716_v14 }
 0xdc5   :  { %v2063_v46 = vpop.xlane.xlu0 %2062 }
 0xdc9   :  { %v2060_v45 = vpop.xlane.xlu1 %2059  ;;  %v2069_v50 = vpop.xlane.xlu0 %2068 }
 0xdca   :  { %3666 = vrcp.f32 %v2060_v45 }
 0xdcb   :  { %3668 = vrcp.f32 %v2063_v46 }
 0xdcd   :  { %v2066_v47 = vpop.xlane.xlu1 %2065  ;;  %v2451_v59 = vpop.permute.xlu0 %2450 }
 0xdce   :  { %3670 = vrcp.f32 %v2066_v47  ;;  %v2456_v7 = vsel %vm669_vm3, %v2451_v59, 0 }
 0xdd1   :  { %v2072_v48 = vpop.xlane.xlu1 %2071 }
 0xdd2   :  { %3672 = vrcp.f32 %v2072_v48 }
 0xdd3   :  { %3674 = vrcp.f32 %v2069_v50 }
 0xdd4   :  { %v3667_v51 = vpop.eup %3666 }
 0xdd5   :  { %v2084_v53 = vmul.f32 %v3667_v51, %v3653_v22  ;;  %v3669_v54 = vpop.eup %3668  ;;  %v2401_v3 = vpop.permute.xlu1 %2400 }
 0xdd6   :  { %v2085_v62 = vmul.f32 %v3669_v54, %v4277_v26  ;;  %v2406_v5 = vsel %vm669_vm3, %v2401_v3, 0 }
 0xdd7   :  { %v2090_v8 = vpack.c.bf16 %v2084_v53, %v2083_v52 }
 0xdd8   :  { %v3671_v55 = vpop.eup %3670 }
 0xdd9   :  { %v2086_v56 = vmul.f32 %v3671_v55, %v3657_v32  ;;  %3424 = vmatmul.mubr.msk.bf16.vlgmr.msra.gmra.mrb[52].mxu0 %vm573_vm4, %v2090_v8  ;;  %v2239_v60 = vrot.slane %v2090_v8, 4 }
 0xdda   :  { %3434 = vmatpush3.bf16.msra.mxu0 %v2308_v58  ;;  %3435 = vmatprep.mubr.msk.bf16.mxu0 %vm3717_vm1, %v3716_v14 }
 0xddb   :  { %3430 = vmatmul.mubr.msk.bf16.vlgmr.msra.gmra.mrb[72].mxu1 %vm573_vm4, %v2239_v60  ;;  %3445 = vmatprep.subr.bf16.mxu0 %v3716_v14  ;;  %v2091_v0 = vpack.c.bf16 %v2086_v56, %v2085_v62 }
 0xddc   :  { %3440 = vmatpush3.bf16.msra.mxu1 %v2358_v61  ;;  %3441 = vmatprep.mubr.msk.bf16.mxu1 %vm3717_vm1, %v3716_v14  ;;  %v3673_v63 = vpop.eup %3672 }
 0xddd   :  { %3451 = vmatprep.subr.bf16.mxu1 %v3716_v14  ;;  %v3675_v4 = vpop.eup %3674  ;;  %v2088_v2 = vmul.f32 %v3673_v63, %v4287_v29  ;;  %v2351_v1 = vrot.slane %v2091_v0, 4 }
 0xdde   :  { %v2087_v6 = vmul.f32 %v3675_v4, %v4281_v28  ;;  %v3585_v28 = vld [vmem:[%s4478_s5 + $0x28] sm:$0xff]  }
 0xde0   :  { %v2092_v11 = vpack.c.bf16 %v2088_v2, %v2087_v6 }
 0xde1   :  { %3436 = vmatmul.mubr.msk.bf16.vlgmr.msra.gmra.mrb[56].mxu0 %vm573_vm4, %v2091_v0 }
 0xde2   :  { %3446 = vmatpush3.bf16.msra.mxu0 %v2406_v5  ;;  %3447 = vmatprep.mubr.msk.bf16.mxu0 %vm3717_vm1, %v3716_v14  ;;  %v2449_v12 = vrot.slane %v2092_v11, 4  ;;  %v3064_v5 = vld [vmem:[%s4479_s6 + $0x1] ss:$0 sm:$0xff] }
 0xde3   :  { %3442 = vmatmul.mubr.msk.bf16.vlgmr.msra.gmra.mrb[76].mxu1 %vm573_vm4, %v2351_v1  ;;  %3457 = vmatprep.subr.bf16.mxu0 %v3716_v14 }
 0xde4   :  { %3452 = vmatpush3.bf16.msra.mxu1 %v2456_v7  ;;  %3453 = vmatprep.mubr.msk.bf16.mxu1 %vm3717_vm1, %v3716_v14 }
 0xde5   :  { %3469 = vmatprep.subr.bf16.mxu1 %v3716_v14 }
 0xde9   :  { %3448 = vmatmul.mubr.msk.bf16.vlgmr.msra.gmra.mrb[60].mxu0 %vm573_vm4, %v2092_v11 }
 0xdea   :  { %3465 = vmatprep.mubr.msk.bf16.mxu0 %vm3717_vm1, %v3716_v14  ;;  %3458 = vmatpush3.bf16.msra.mxu0 %v3584_v13 }
 0xdeb   :  { %3454 = vmatmul.mubr.msk.bf16.vlgmr.msra.gmra.mrb[80].mxu1 %vm573_vm4, %v2449_v12  ;;  %3459 = vmatprep.subr.bf16.mxu0 %v3716_v14 }
 0xdec   :  { %3477 = vmatprep.mubr.msk.bf16.mxu1 %vm3717_vm1, %v3716_v14 }
 0xdee   :  { %3460 = vmatpush3.bf16.msra.mxu0 %v3585_v28 }
 0xdef   :  { %3461 = vmatprep.subr.bf16.mxu0 %v3716_v14 }
 0xdf2   :  { %3462 = vmatpush3.bf16.msra.mxu0 %v3586_v35 }
 0xdf3   :  { %3463 = vmatprep.subr.bf16.mxu0 %v3716_v14 }
 0xdf6   :  { %3464 = vmatpush3.bf16.msra.mxu0 %v3587_v38 }
 0xdf7   :  { %3481 = vmatprep.subr.bf16.mxu0 %v3716_v14 }
 0xe77   :  { %v2133_v16 = vpop.f32.mrb[48].mxu0 }
 0xe78   :  { %v3413_v19 = vpop.f32.mrb[49].mxu0 }
 0xe79   :  { %v2136_v20 = vpop.f32.mrb[50].mxu0  ;;  %v2184_v18 = vpop.f32.mrb[68].mxu1 }
 0xe7a   :  { %v3414_v21 = vpop.f32.mrb[51].mxu0  ;;  %v3419_v39 = vpop.f32.mrb[69].mxu1 }
 0xe7b   :  { %v2187_v23 = vpop.f32.mrb[70].mxu1 }
 0xe7c   :  { %v3420_v26 = vpop.f32.mrb[71].mxu1 }
 0xeac   :  { %v2232_v22 = vpop.f32.mrb[52].mxu0 }
 0xead   :  { %v3425_v27 = vpop.f32.mrb[53].mxu0 }
 0xeae   :  { %v2235_v30 = vpop.f32.mrb[54].mxu0  ;;  %v2282_v31 = vpop.f32.mrb[72].mxu1 }
 0xeaf   :  { %v3426_v32 = vpop.f32.mrb[55].mxu0  ;;  %v3431_v34 = vpop.f32.mrb[73].mxu1 }
 0xeb0   :  { %v2285_v29 = vpop.f32.mrb[74].mxu1  ;;  %v3589_v32 = vld [vmem:[%s4480_s7 + $0x28] sm:$0xff]   ;;  %v3590_v34 = vld [vmem:[%s4480_s7 + $0x30] sm:$0xff]  }
 0xeb1   :  { %v3432_v33 = vpop.f32.mrb[75].mxu1  ;;  %v3591_v29 = vld [vmem:[%s4480_s7 + $0x38] sm:$0xff]  }
 0xeb4   :  { %v2344_v36 = vpop.f32.mrb[56].mxu0 }
 0xeb5   :  { %v3437_v37 = vpop.f32.mrb[57].mxu0 }
 0xeb6   :  { %v2347_v15 = vpop.f32.mrb[58].mxu0  ;;  %v2394_v17 = vpop.f32.mrb[76].mxu1 }
 0xeb7   :  { %v3527_v40 = vpack.i.bf16 %v2394_v17, %v2184_v18  ;;  %v3438_v57 = vpop.f32.mrb[59].mxu0  ;;  %v3443_v41 = vpop.f32.mrb[77].mxu1 }
 0xeb8   :  { %v2397_v42 = vpop.f32.mrb[78].mxu1  ;;  %v3072_v57 = vld [vmem:[%s4484_s11 + $0x4] ss:$0 sm:$0xff] }
 0xeb9   :  { %3528 = vrot.lane.b32.xlu1 %v3527_v40, %s3723_s29  ;;  %v3444_v9 = vpop.f32.mrb[79].mxu1 }
 0xebc   :  { %v2442_v10 = vpop.f32.mrb[60].mxu0 }
 0xebd   :  { %v3532_v43 = vpack.i.bf16 %v2442_v10, %v2232_v22  ;;  %v3449_v44 = vpop.f32.mrb[61].mxu0  ;;  %v3073_v10 = vld [vmem:[%s4484_s11 + $0x5] ss:$0 sm:$0xff] }
 0xebe   :  { %v2445_v45 = vpop.f32.mrb[62].mxu0  ;;  %v2492_v46 = vpop.f32.mrb[80].mxu1 }
 0xebf   :  { %v3537_v47 = vpack.i.bf16 %v2492_v46, %v2282_v31  ;;  %v3455_v48 = vpop.f32.mrb[81].mxu1  ;;  %3533 = vrot.lane.b32.xlu0 %v3532_v43, %s3720_s26  ;;  %v3450_v49 = vpop.f32.mrb[63].mxu0 }
 0xec0   :  { %v2495_v50 = vpop.f32.mrb[82].mxu1  ;;  %v3593_v48 = vld [vmem:[%s4482_s9 + $0x48] sm:$0xff]   ;;  %v3594_v49 = vld [vmem:[%s4482_s9 + $0x50] sm:$0xff]  }
 0xec1   :  { %3538 = vrot.lane.b32.xlu1 %v3537_v47, %s3721_s27  ;;  %v3456_v51 = vpop.f32.mrb[83].mxu1  ;;  %v3592_v47 = vld [vmem:[%s4482_s9 + $0x40] sm:$0xff]   ;;  %v3595_v50 = vld [vmem:[%s4482_s9 + $0x58] sm:$0xff]  }
 0xec2   :  { %v3596_v51 = vld [vmem:[%s4482_s9 + $0x60] sm:$0xff]  }
 0xf2b   :  { %v3529_v52 = vpop.permute.xlu1 %3528 }
 0xf2c   :  { %v3531_v53 = vunpack.i.h.bf16 %v3529_v52  ;;  %v3530_v54 = vunpack.i.l.bf16 %v3529_v52  ;;  %v3597_v52 = vld [vmem:[%s4482_s9 + $0x68] sm:$0xff]  }
 0xf2e   :  { %v2300_v58 = vsel %vm169_vm2, %v2133_v16, %v3530_v54  ;;  %v2510_v60 = vsel %vm169_vm2, %v2344_v36, %v3531_v53  ;;  %v3598_v53 = vld [vmem:[%s4482_s9 + $0x70] sm:$0xff]   ;;  %v3599_v54 = vld [vmem:[%s4482_s9 + $0x78] sm:$0xff]  }
 0xf31   :  { %v3534_v8 = vpop.permute.xlu0 %3533 }
 0xf32   :  { %v3536_v55 = vunpack.i.h.bf16 %v3534_v8  ;;  %v3535_v56 = vunpack.i.l.bf16 %v3534_v8  ;;  %v3083_v8 = vld [vmem:[%s4481_s8 + $0x1] ss:$0 sm:$0xff] }
 0xf33   :  { %v3539_v61 = vpop.permute.xlu1 %3538 }
 0xf34   :  { %v2511_v62 = vsel %vm875_vm5, %v2510_v60, %v3536_v55  ;;  %v2301_v0 = vsel %vm875_vm5, %v2300_v58, %v3535_v56  ;;  %v3541_v63 = vunpack.i.h.bf16 %v3539_v61  ;;  %v3540_v3 = vunpack.i.l.bf16 %v3539_v61 }
 0xf36   :  { %v2302_v4 = vsel %vm877_vm6, %v2301_v0, %v3540_v3  ;;  %v2512_v59 = vsel %vm877_vm6, %v2511_v62, %v3541_v63 }
 0xf37   :  { %v2513_v2 = vpack.c.bf16 %v2512_v59, %v2302_v4 }
 0xf39   :  { %3466 = vmatmul.mubr.msk.bf16.vlgmr.msra.gmra.mrb[64].mxu0 %vm117_vm0, %v2513_v2 }
 0xf3a   :  { %3497 = vmatprep.mubr.msk.bf16.mxu0 %vm3717_vm1, %v3716_v14  ;;  %3482 = vmatpush3.bf16.msra.mxu0 %v3592_v47 }
 0xf3b   :  { %3483 = vmatprep.subr.bf16.mxu0 %v3716_v14 }
 0xf3e   :  { %3484 = vmatpush3.bf16.msra.mxu0 %v3593_v48 }
 0xf3f   :  { %3485 = vmatprep.subr.bf16.mxu0 %v3716_v14 }
 0xf42   :  { %3486 = vmatpush3.bf16.msra.mxu0 %v3594_v49 }
 0xf43   :  { %3487 = vmatprep.subr.bf16.mxu0 %v3716_v14 }
 0xf46   :  { %3488 = vmatpush3.bf16.msra.mxu0 %v3595_v50  ;;  %v3117_v50 = vld [vmem:[%s4484_s11 + $0x6] ss:$0 sm:$0xff] }
 0xf47   :  { %3489 = vmatprep.subr.bf16.mxu0 %v3716_v14 }
 0xf4a   :  { %3490 = vmatpush3.bf16.msra.mxu0 %v3596_v51 }
 0xf4b   :  { %3491 = vmatprep.subr.bf16.mxu0 %v3716_v14 }
 0xf4e   :  { %3492 = vmatpush3.bf16.msra.mxu0 %v3597_v52 }
 0xf4f   :  { %3493 = vmatprep.subr.bf16.mxu0 %v3716_v14 }
 0xf52   :  { %3494 = vmatpush3.bf16.msra.mxu0 %v3598_v53  ;;  %v3118_v53 = vld [vmem:[%s4484_s11 + $0x7] ss:$0 sm:$0xff] }
 0xf53   :  { %3495 = vmatprep.subr.bf16.mxu0 %v3716_v14 }
 0xf56   :  { %3496 = vmatpush3.bf16.msra.mxu0 %v3599_v54 }
0x100c   :  { %v2592_v1 = vpop.f32.mrb[64].mxu0 }
0x100d   :  { %v2593_v6 = vadd.f32 %v3064_v5, %v2592_v1  ;;  %v3467_v7 = vpop.f32.mrb[65].mxu0 }
0x100e   :  { %v2595_v11 = vpop.f32.mrb[66].mxu0 }
0x100f   :  { %v2596_v12 = vadd.f32 %v3064_v5, %v2595_v11  ;;  %v3468_v13 = vpop.f32.mrb[67].mxu0  ;;  %v2599_v16 = vadd.f32 %v2593_v6, %v4161_v24 }
0x1011   :  { %v2605_v19 = vsel %vm117_vm0, %v2599_v16, 0.0  ;;  %v2600_v20 = vadd.f32 %v2596_v12, %v4163_v25  ;;  %v3588_v25 = vld [vmem:[%s4480_s7 + $0x20] sm:$0xff]  }
0x1012   :  { %2606 = vadd.xlane.f32.xlu0 %v2605_v19  ;;  %3470 = vmatpush3.bf16.msra.mxu1 %v3588_v25 }
0x1013   :  { %v2608_v18 = vsel %vm117_vm0, %v2600_v20, 0.0  ;;  %3471 = vmatprep.subr.bf16.mxu1 %v3716_v14 }
0x1014   :  { %2609 = vadd.xlane.f32.xlu1 %v2608_v18 }
0x1016   :  { %3472 = vmatpush3.bf16.msra.mxu1 %v3589_v32 }
0x1017   :  { %3473 = vmatprep.subr.bf16.mxu1 %v3716_v14 }
0x101a   :  { %3474 = vmatpush3.bf16.msra.mxu1 %v3590_v34  ;;  %v3690_v34 = vld [vmem:[%s4474_s1] sm:$0x3] }
0x101b   :  { %3475 = vmatprep.subr.bf16.mxu1 %v3716_v14 }
0x101e   :  { %3476 = vmatpush3.bf16.msra.mxu1 %v3591_v29  ;;  %v2945_v29 = vsel %vm2944_vm7, %v3690_v34, 0.0 }
0x109f   :  { %v2607_v21 = vpop.xlane.xlu0 %2606 }
0x10a0   :  { %v2611_v39 = vmul.f32 0.015625, %v2607_v21 }
0x10a1   :  { %v2610_v23 = vpop.xlane.xlu1 %2609 }
0x10a2   :  { %v2613_v26 = vsub.f32 %v2599_v16, %v2611_v39  ;;  %v2612_v22 = vmul.f32 0.015625, %v2610_v23  ;;  %v3106_v39 = vld [vmem:[%s4483_s10 + $0x1] ss:$0 sm:$0xff] }
0x10a4   :  { %v2614_v27 = vsub.f32 %v2600_v20, %v2612_v22  ;;  %v2615_v28 = vmul.f32 %v2613_v26, %v2613_v26 }
0x10a6   :  { %v2617_v30 = vsel %vm117_vm0, %v2615_v28, 0.0  ;;  %v2616_v31 = vmul.f32 %v2614_v27, %v2614_v27 }
0x10a7   :  { %2618 = vadd.xlane.f32.xlu0 %v2617_v30 }
0x10a8   :  { %v2620_v24 = vsel %vm117_vm0, %v2616_v31, 0.0 }
0x10ab   :  { %2621 = vadd.xlane.f32.xlu0 %v2620_v24 }
0x1134   :  { %v2619_v33 = vpop.xlane.xlu0 %2618 }
0x1135   :  { %v2623_v35 = vmul.f32 0.015625, %v2619_v33 }
0x1137   :  { %v2625_v36 = vadd.f32 1e-07, %v2623_v35 }
0x1138   :  { %v2622_v37 = vpop.xlane.xlu0 %2621 }
0x1139   :  { %3676 = vrsqrt.f32 %v2625_v36  ;;  %v2624_v38 = vmul.f32 0.015625, %v2622_v37 }
0x113b   :  { %v2626_v15 = vadd.f32 1e-07, %v2624_v38 }
0x113d   :  { %3678 = vrsqrt.f32 %v2626_v15 }
0x1143   :  { %v3677_v17 = vpop.eup %3676 }
0x1144   :  { %v2629_v40 = vmul.f32 %v3677_v17, %v2613_v26 }
0x1146   :  { %v2637_v42 = vmul.f32 %v3072_v57, %v2629_v40 }
0x1147   :  { %v3679_v41 = vpop.eup %3678 }
0x1148   :  { %v2630_v9 = vmul.f32 %v3679_v41, %v2614_v27  ;;  %v4394_v44 = vadd.f32 %v3073_v10, %v2637_v42  ;;  %v2915_v42 = vld [vmem:[%s4475_s2 + $0x8] sm:$0xff] }
0x114a   :  { %v2638_v43 = vmul.f32 %v3072_v57, %v2630_v9  ;;  %v2914_v9 = vld [vmem:[%s4475_s2] sm:$0xff]  ;;  %s3725_s2 = smov [#allocation2]  }
0x114b   :  { %s2959_s11 = sshll.u32 %s3725_s2, 4  ;;  %s2960_s11 = int_to_ptr.vmem [resolvable:$true] %s2959_s11 }
0x114c   :  { %v4396_v45 = vadd.f32 %v3073_v10, %v2638_v43  ;;  %s3691_s4 = scalar_lea.vmem %s2960_s11, 32  ;;  %p3696_p1 = scmp.lt.s32.totalorder %s2960_s11, %s2960_s11 }
0x114d   :  { %p3692_p0 = scmp.ne.s32.totalorder %s2960_s11, %s3691_s4  ;;  %p3697_p2 = scmp.lt.s32.totalorder %s3691_s4, %s3691_s4 }
0x114e   :  { %v2647_v46 = vpack.c.bf16 %v4396_v45, %v4394_v44 }
0x114f   :  { %p3698_p3 = por %p3697_p2, %p3696_p1 }
0x1150   :  { %3478 = vmatmul.mubr.msk.bf16.vlgmr.msra.gmra.mrb[84].mxu1 %vm117_vm0, %v2647_v46 }
0x1151   :  { %p3699_p4 = pnand %p3698_p3, %p3692_p0 }
0x1223   :  { %v2726_v55 = vpop.f32.mrb[84].mxu1 }
0x1224   :  { %v2727_v56 = vadd.f32 %v3083_v8, %v2726_v55  ;;  %v3479_v58 = vpop.f32.mrb[85].mxu1 }
0x1225   :  { %v2729_v60 = vpop.f32.mrb[86].mxu1 }
0x1226   :  { %v2733_v61 = vmul.f32 %v2727_v56, %v2727_v56  ;;  %v2730_v62 = vadd.f32 %v3083_v8, %v2729_v60  ;;  %v3480_v0 = vpop.f32.mrb[87].mxu1 }
0x1228   :  { %v2735_v63 = vmul.f32 %v2733_v61, %v2727_v56  ;;  %v2734_v3 = vmul.f32 %v2730_v62, %v2730_v62 }
0x122a   :  { %v2737_v4 = vmul.f32 0.044715, %v2735_v63  ;;  %v2736_v14 = vmul.f32 %v2734_v3, %v2730_v62 }
0x122c   :  { %v2739_v59 = vadd.f32 %v2737_v4, %v2727_v56  ;;  %v2738_v2 = vmul.f32 0.044715, %v2736_v14 }
0x122e   :  { %v2741_v5 = vmul.f32 0.7978846, %v2739_v59  ;;  %v2740_v1 = vadd.f32 %v2738_v2, %v2730_v62 }
0x1230   :  { %3680 = vtanh.f32 %v2741_v5  ;;  %v2742_v6 = vmul.f32 0.7978846, %v2740_v1 }
0x1232   :  { %3682 = vtanh.f32 %v2742_v6 }
0x123a   :  { %v3681_v7 = vpop.eup %3680 }
0x123b   :  { %v2745_v11 = vadd.f32 1.0, %v3681_v7 }
0x123c   :  { %v3683_v12 = vpop.eup %3682 }
0x123d   :  { %v2747_v13 = vmul.f32 0.5, %v2745_v11  ;;  %v2746_v16 = vadd.f32 1.0, %v3683_v12 }
0x123f   :  { %v2748_v19 = vmul.f32 0.5, %v2746_v16  ;;  %v2749_v20 = vmul.f32 %v2747_v13, %v2727_v56 }
0x1241   :  { %v2750_v18 = vmul.f32 %v2748_v19, %v2730_v62 }
0x1243   :  { %v2751_v21 = vpack.c.bf16 %v2750_v18, %v2749_v20 }
0x1245   :  { %3498 = vmatmul.mubr.bf16.vlgmr.msra.gmra.mrb[68].mxu0 %v2751_v21 }
0x1318   :  { %v2859_v23 = vpop.f32.mrb[68].mxu0 }
0x1319   :  { %v2860_v26 = vadd.f32 %v3106_v39, %v2859_v23  ;;  %v3499_v22 = vpop.f32.mrb[69].mxu0 }
0x131a   :  { %v2862_v27 = vpop.f32.mrb[70].mxu0 }
0x131b   :  { %v2863_v28 = vadd.f32 %v3106_v39, %v2862_v27  ;;  %v3500_v30 = vpop.f32.mrb[71].mxu0  ;;  %v2866_v31 = vadd.f32 %v2860_v26, %v4394_v44 }
0x131d   :  { %v2872_v24 = vsel %vm117_vm0, %v2866_v31, 0.0  ;;  %v2867_v25 = vadd.f32 %v2863_v28, %v4396_v45 }
0x131e   :  { %2873 = vadd.xlane.f32.xlu1 %v2872_v24 }
0x131f   :  { %v2875_v32 = vsel %vm117_vm0, %v2867_v25, 0.0 }
0x1320   :  { %2876 = vadd.xlane.f32.xlu0 %v2875_v32 }
0x1322   :  { %2946 = vadd.xlane.f32.xlu1 %v2945_v29 }
0x13ab   :  { %v2874_v33 = vpop.xlane.xlu1 %2873 }
0x13ac   :  { %v2878_v35 = vmul.f32 0.015625, %v2874_v33 }
0x13ad   :  { %v2877_v36 = vpop.xlane.xlu0 %2876 }
0x13ae   :  { %v2880_v37 = vsub.f32 %v2866_v31, %v2878_v35  ;;  %v2879_v38 = vmul.f32 0.015625, %v2877_v36 }
0x13af   :  { %v2947_v10 = vpop.xlane.xlu1 %2946 }
0x13b0   :  { %v2881_v15 = vsub.f32 %v2867_v25, %v2879_v38  ;;  %v2882_v17 = vmul.f32 %v2880_v37, %v2880_v37  ;;  %v2948_v3 = vmax.f32 %v2947_v10, 1e-09 }
0x13b2   :  { %v2884_v40 = vsel %vm117_vm0, %v2882_v17, 0.0  ;;  %v2883_v57 = vmul.f32 %v2881_v15, %v2881_v15 }
0x13b3   :  { %2885 = vadd.xlane.f32.xlu1 %v2884_v40 }
0x13b4   :  { %v2887_v41 = vsel %vm117_vm0, %v2883_v57, 0.0 }
0x13b5   :  { %2888 = vadd.xlane.f32.xlu0 %v2887_v41 }
0x13c4   :  { %2923 = vperm.xlu1 %3543, %v2915_v42  }
0x13cb   :  { %2918 = vperm.xlu0 %3542, %v2914_v9  }
0x1440   :  { %v2886_v43 = vpop.xlane.xlu1 %2885 }
0x1441   :  { %v2890_v44 = vmul.f32 0.015625, %v2886_v43 }
0x1442   :  { %v2889_v45 = vpop.xlane.xlu0 %2888 }
0x1443   :  { %v2892_v46 = vadd.f32 1e-07, %v2890_v44  ;;  %v2891_v47 = vmul.f32 0.015625, %v2889_v45 }
0x1444   :  { %v2924_v60 = vpop.permute.xlu1 %2923 }
0x1445   :  { %3684 = vrsqrt.f32 %v2892_v46  ;;  %v2893_v48 = vadd.f32 1e-07, %v2891_v47 }
0x1447   :  { %3686 = vrsqrt.f32 %v2893_v48 }
0x1448   :  { %3688 = vrcp.f32 %v2948_v3 }
0x144a   :  { %v2919_v55 = vpop.permute.xlu0 %2918 }
0x144f   :  { %v3685_v49 = vpop.eup %3684 }
0x1450   :  { %v2896_v51 = vmul.f32 %v3685_v49, %v2880_v37 }
0x1451   :  { %v3687_v52 = vpop.eup %3686 }
0x1452   :  { %v2904_v54 = vmul.f32 %v3117_v50, %v2896_v51  ;;  %v2897_v8 = vmul.f32 %v3687_v52, %v2881_v15  ;;  %v3689_v20 = vpop.eup %3688 }
0x1454   :  { %v2912_v56 = vadd.f32 %v3118_v53, %v2904_v54  ;;  %v2905_v58 = vmul.f32 %v3117_v50, %v2897_v8 }
0x1456   :  { %v2926_v61 = vmul.f32 %v2919_v55, %v2912_v56  ;;  %v2913_v62 = vadd.f32 %v3118_v53, %v2905_v58 }
0x1458   :  { %v2928_v0 = vsel %vm117_vm0, %v2926_v61, 0.0  ;;  %v2927_v63 = vmul.f32 %v2924_v60, %v2913_v62 }
0x1459   :  { %v2929_v4 = vrot.slane %v2928_v0, 4 }
0x145a   :  { %v2935_v14 = vsel %vm117_vm0, %v2927_v63, 0.0 }
0x145b   :  { %v2930_v59 = vadd.f32 %v2929_v4, %v2928_v0  ;;  %v2936_v2 = vrot.slane %v2935_v14, 4 }
0x145d   :  { %v2931_v5 = vrot.slane %v2930_v59, 2  ;;  %v2937_v1 = vadd.f32 %v2936_v2, %v2935_v14 }
0x145f   :  { %v2932_v6 = vadd.f32 %v2931_v5, %v2930_v59  ;;  %v2938_v7 = vrot.slane %v2937_v1, 2 }
0x1461   :  { %v2933_v11 = vrot.slane %v2932_v6, 1  ;;  %v2939_v12 = vadd.f32 %v2938_v7, %v2937_v1 }
0x1463   :  { %v2940_v13 = vrot.slane %v2939_v12, 1  ;;  %v2934_v16 = vadd.f32 %v2933_v11, %v2932_v6 }
0x1465   :  { %v2941_v19 = vadd.f32 %v2940_v13, %v2939_v12 }
0x1467   :  { %v2943_v18 = vsel %vm2942_vm8, %v2934_v16, %v2941_v19 }
0x1468   :  { %v2950_v21 = vmul.f32 %v3689_v20, %v2943_v18 }
0x146a   :  { %2952 = vst.msk [vmem:[#allocation2] sm:$0x3] %vm2951_vm9, %v2950_v21 }
0x146b   :  { %3702 = shalt.err (!%p3699_p4)
}
0x146c   :  { %s3703_s28 = scalar_lea.hbm %s4485_s12, 32 }
0x146d   :  { %p3704_p5 = scmp.ne.s32.totalorder %s4485_s12, %s3703_s28  ;;  %p3707_p6 = scmp.lt.u32.totalorder %s3703_s28, %s4485_s12 }
0x146f   :  { %p3709_p7 = pnand %p3707_p6, %p3704_p5 }
0x1471   :  { %3712 = shalt.err (!%p3709_p7)
}
0x1472   :  { %2962 = dma.vmem_to_hbm [thread:$0]  %s2960_s11, 32, %s4485_s12, [#allocation3]  }
0x1473   :  { %3713 = dma.done.wait [#allocation3], 32  }
0x1474   :  { %3714 = vsyncadd [#allocation3], 4294967264 }
0x1475   :  { %2966 = vsyncpa [#allocation3], 1 }

</bundles_post_ra>
